<compile_context>
chip_gen: v7x
topology: tpu7x:2x2x1
jax: 0.10.0
libtpu: 0.0.40
codegen_flags: <defaults>
</compile_context>

<pallas_src>
import functools

import numpy as np
import jax
import jax.numpy as jnp
from jax.experimental import pallas as pl
from jax.experimental.pallas import tpu as pltpu


# ----------------------------------------------------------------------------
# Pallas kernel: tiled matmul (bf16 operands, f32 accumulator) + bias (+ ReLU)
# ----------------------------------------------------------------------------
def _linear_kernel(a_ref, b_ref, bias_ref, o_ref, acc_ref, *, relu):
    @pl.when(pl.program_id(1) == 0)
    def _():
        acc_ref[...] = jnp.zeros_like(acc_ref)

    acc_ref[...] += jnp.dot(a_ref[...], b_ref[...],
                            preferred_element_type=jnp.float32)

    @pl.when(pl.program_id(1) == pl.num_programs(1) - 1)
    def _():
        r = acc_ref[...] + bias_ref[...]
        if relu:
            r = jnp.maximum(r, 0.0)
        o_ref[...] = r.astype(o_ref.dtype)


def _round_up(x, m):
    return -(-x // m) * m


def _pick_tile(dim, prefer=512):
    for t in (prefer, 256, 128):
        if dim % t == 0:
            return t
    return dim


def pallas_linear(a, w_p, b_p, n_out, relu=False):
    """a: (M, K) f32.  w_p: (Kp, Np) bf16 pre-packed.  b_p: (1, Np) f32.

    Returns relu?(a @ w + b)[:, :n_out] in f32.  Single full-M tile; grid over
    (N tiles [parallel], K tiles [arbitrary]) with an f32 VMEM accumulator.
    """
    M, K = a.shape
    Kp, Np = w_p.shape
    Mp = max(_round_up(M, 8), 8)
    tn = _pick_tile(Np)
    tk = _pick_tile(Kp)

    a_p = jnp.pad(a.astype(jnp.bfloat16), ((0, Mp - M), (0, Kp - K)))
    grid = (Np // tn, Kp // tk)

    out = pl.pallas_call(
        functools.partial(_linear_kernel, relu=relu),
        out_shape=jax.ShapeDtypeStruct((Mp, Np), jnp.float32),
        grid_spec=pltpu.PrefetchScalarGridSpec(
            num_scalar_prefetch=0,
            grid=grid,
            in_specs=[
                pl.BlockSpec((Mp, tk), lambda j, k: (0, k)),   # activations
                pl.BlockSpec((tk, tn), lambda j, k: (k, j)),   # weights (K, N)
                pl.BlockSpec((1, tn), lambda j, k: (0, j)),    # bias
            ],
            out_specs=pl.BlockSpec((Mp, tn), lambda j, k: (0, j)),
            scratch_shapes=[pltpu.VMEM((Mp, tn), jnp.float32)],
        ),
        compiler_params=pltpu.CompilerParams(
            dimension_semantics=("parallel", "arbitrary")),
    )(a_p, w_p, b_p)
    return out[:M, :n_out]


# ----------------------------------------------------------------------------
# roi_pool (torchvision semantics), vectorized on device.
# TODO(synk): data-dependent ragged windows -> implemented as a masked max in
# plain JAX (fused under jit) rather than a Pallas gather kernel.
# ----------------------------------------------------------------------------
def roi_pool_jax(feat, boxes, batch_idx, out_size=(7, 7), spatial_scale=1.0 / 16.0):
    B, C, H, W = feat.shape
    PH, PW = out_size

    # round(x * scale) with round-half-away-from-zero (coords are >= 0)
    q = lambda v: jnp.floor(v * spatial_scale + 0.5).astype(jnp.int32)
    x1, y1, x2, y2 = q(boxes[:, 0]), q(boxes[:, 1]), q(boxes[:, 2]), q(boxes[:, 3])
    roi_w = jnp.maximum(x2 - x1 + 1, 1).astype(jnp.float32)
    roi_h = jnp.maximum(y2 - y1 + 1, 1).astype(jnp.float32)
    bin_h = roi_h / PH
    bin_w = roi_w / PW

    ph = jnp.arange(PH, dtype=jnp.float32)
    pw = jnp.arange(PW, dtype=jnp.float32)
    hstart = jnp.clip(jnp.floor(ph[None, :] * bin_h[:, None]).astype(jnp.int32) + y1[:, None], 0, H)
    hend = jnp.clip(jnp.ceil((ph[None, :] + 1.0) * bin_h[:, None]).astype(jnp.int32) + y1[:, None], 0, H)
    wstart = jnp.clip(jnp.floor(pw[None, :] * bin_w[:, None]).astype(jnp.int32) + x1[:, None], 0, W)
    wend = jnp.clip(jnp.ceil((pw[None, :] + 1.0) * bin_w[:, None]).astype(jnp.int32) + x1[:, None], 0, W)

    hh = jnp.arange(H, dtype=jnp.int32)
    ww = jnp.arange(W, dtype=jnp.int32)
    mask_h = (hh[None, None, :] >= hstart[:, :, None]) & (hh[None, None, :] < hend[:, :, None])  # (R,PH,H)
    mask_w = (ww[None, None, :] >= wstart[:, :, None]) & (ww[None, None, :] < wend[:, :, None])  # (R,PW,W)

    feat_r = feat[batch_idx]                                                   # (R,C,H,W)
    neg = jnp.finfo(jnp.float32).min
    t = jnp.where(mask_w[:, None, :, None, :], feat_r[:, :, None, :, :], neg)  # (R,C,PW,H,W)
    t = t.max(axis=-1)                                                         # (R,C,PW,H)
    t = jnp.where(mask_h[:, None, None, :, :], t[:, :, :, None, :], neg)       # (R,C,PW,PH,H)
    t = t.max(axis=-1)                                                         # (R,C,PW,PH)
    out = jnp.transpose(t, (0, 1, 3, 2))                                       # (R,C,PH,PW)

    empty = (hend <= hstart)[:, None, :, None] | (wend <= wstart)[:, None, None, :]
    return jnp.where(empty, 0.0, out)


# ----------------------------------------------------------------------------
# HeadVGG16 forward
# ----------------------------------------------------------------------------
def _head_forward(params, feat, boxes, batch_idx, *, num_classes):
    regions = roi_pool_jax(feat, boxes, batch_idx, (7, 7), 1.0 / 16.0)   # (R,512,7,7)
    R = regions.shape[0]
    y = regions.reshape(R, -1)                                            # (R, 25088)
    y = pallas_linear(y, params['cls1_w'], params['cls1_b'], 4096, relu=True)
    y = pallas_linear(y, params['cls2_w'], params['cls2_b'], 4096, relu=True)
    # fused fc_loc (nc*4) + fc_cls (nc)
    head = pallas_linear(y, params['head_w'], params['head_b'], num_classes * 5, relu=False)
    pred_roi_loc = head[:, :num_classes * 4].reshape(R, num_classes, 4)
    pred_roi_cls = head[:, num_classes * 4:]
    return pred_roi_cls, pred_roi_loc


def _ref_linear(a, w_p, b_p, n_out, relu=False):
    K = a.shape[1]
    r = jnp.dot(a.astype(jnp.bfloat16), w_p[:K, :n_out],
                preferred_element_type=jnp.float32) + b_p[0, :n_out]
    return jnp.maximum(r, 0.0) if relu else r


def _reference_forward(params, feat, boxes, batch_idx, num_classes):
    regions = roi_pool_jax(feat, boxes, batch_idx, (7, 7), 1.0 / 16.0)
    R = regions.shape[0]
    y = regions.reshape(R, -1)
    y = _ref_linear(y, params['cls1_w'], params['cls1_b'], 4096, relu=True)
    y = _ref_linear(y, params['cls2_w'], params['cls2_b'], 4096, relu=True)
    head = _ref_linear(y, params['head_w'], params['head_b'], num_classes * 5)
    return head[:, num_classes * 4:], head[:, :num_classes * 4].reshape(R, num_classes, 4)


class HeadVGG16:
    """Faster R-CNN VGG16 ROI head. Weights are pre-packed (K,N)/bf16 at init.

    TODO(synk): the reference loads pretrained VGG16 classifier weights; here
    they are deterministic random init (no file / network access allowed).
    """

    def __init__(self, num_classes, key):
        self.num_classes = num_classes
        kc1, kc2, kl, kc = jax.random.split(key, 4)

        K1 = 512 * 7 * 7
        cls1 = jax.random.normal(kc1, (K1, 4096), jnp.float32) * np.sqrt(2.0 / K1)
        cls2 = jax.random.normal(kc2, (4096, 4096), jnp.float32) * np.sqrt(2.0 / 4096)
        loc_w = jax.random.normal(kl, (4096, num_classes * 4), jnp.float32) * 0.001
        clsw = jax.random.normal(kc, (4096, num_classes), jnp.float32) * 0.01
        head_w = jnp.concatenate([loc_w, clsw], axis=1)        # (4096, nc*5)

        def pack_w(w):
            Kp = _round_up(w.shape[0], 128)
            Np = _round_up(w.shape[1], 128)
            return jnp.pad(w, ((0, Kp - w.shape[0]), (0, Np - w.shape[1]))).astype(jnp.bfloat16)

        def pack_b(n):
            Np = _round_up(n, 128)
            return jnp.zeros((1, Np), jnp.float32)

        self.params = {
            'cls1_w': pack_w(cls1), 'cls1_b': pack_b(4096),
            'cls2_w': pack_w(cls2), 'cls2_b': pack_b(4096),
            'head_w': pack_w(head_w), 'head_b': pack_b(num_classes * 5),
        }
        self._fwd = jax.jit(functools.partial(_head_forward, num_classes=num_classes))

    def __call__(self, x, pred_boxes, pred_batch_idx):
        boxes = jnp.asarray(np.asarray(pred_boxes), jnp.float32)
        bidx = jnp.asarray(np.asarray(pred_batch_idx), jnp.int32)
        return self._fwd(self.params, x, boxes, bidx)


# ----------------------------------------------------------------------------
if __name__ == "__main__":
    key = jax.random.PRNGKey(0)
    kp, kf, kb1, kb2 = jax.random.split(key, 4)

    num_classes = 21
    model = HeadVGG16(num_classes=num_classes, key=kp)

    # Small feature map: batch=2, 512 channels, 16x16 spatial (image 256x256 @ stride 16)
    B, C, Hs, Ws = 2, 512, 16, 16
    R = 12
    feat = jax.random.normal(kf, (B, C, Hs, Ws), jnp.float32)

    xy1 = jax.random.uniform(kb1, (R, 2), minval=0.0, maxval=180.0)
    wh = jax.random.uniform(kb2, (R, 2), minval=16.0, maxval=96.0)
    xy2 = jnp.minimum(xy1 + wh, 255.0)
    pred_boxes = np.asarray(jnp.concatenate([xy1, xy2], axis=1), np.float32)
    pred_batch_idx = np.arange(R, dtype=np.int64) % B

    pred_roi_cls, pred_roi_loc = model(feat, pred_boxes, pred_batch_idx)
    jax.block_until_ready(pred_roi_cls)
    jax.block_until_ready(pred_roi_loc)

    assert pred_roi_cls.shape == (R, num_classes)
    assert pred_roi_loc.shape == (R, num_classes, 4)

    # Correctness check against a plain-JAX reference using the same bf16 weights.
    ref_cls, ref_loc = _reference_forward(
        model.params, feat, jnp.asarray(pred_boxes),
        jnp.asarray(pred_batch_idx, jnp.int32), num_classes)
    np.testing.assert_allclose(np.asarray(pred_roi_cls), np.asarray(ref_cls),
                               rtol=3e-2, atol=3e-2)
    np.testing.assert_allclose(np.asarray(pred_roi_loc), np.asarray(ref_loc),
                               rtol=3e-2, atol=3e-2)

    print("KERNEL_OK")
</pallas_src>

<mosaic_0001>
module attributes {stable_mosaic.version = 11 : i64} {
  func.func @_linear_kernel(%arg0: i32, %arg1: i32, %arg2: memref<16x512xbf16, #tpu.memory_space<vmem>>, %arg3: memref<512x512xbf16, #tpu.memory_space<vmem>>, %arg4: memref<1x512xf32, #tpu.memory_space<vmem>>, %arg5: memref<16x512xf32, #tpu.memory_space<vmem>>, %arg6: memref<16x512xf32, #tpu.memory_space<vmem>>) attributes {dimension_semantics = [#tpu.dimension_semantics<parallel>, #tpu.dimension_semantics<arbitrary>], iteration_bounds = array<i64: 8, 49>, scalar_prefetch = 0 : i64, scratch_operands = 1 : i64, tpu.core_type = #tpu.core_type<tc>, window_params = [{transform_indices = @transform_0, window_bounds = array<i64: 16, 512>}, {transform_indices = @transform_1, window_bounds = array<i64: 512, 512>}, {transform_indices = @transform_2, window_bounds = array<i64: 1, 512>}, {transform_indices = @transform_3, window_bounds = array<i64: 16, 512>}]} {
    %c0_i32 = arith.constant 0 : i32
    %0 = arith.cmpi eq, %arg1, %c0_i32 : i32
    %1 = arith.extui %0 : i1 to i32
    %c0_i32_0 = arith.constant 0 : i32
    %2 = arith.cmpi ne, %1, %c0_i32_0 : i32
    scf.if %2 {
      %cst_9 = arith.constant 0.000000e+00 : f32
      %12 = vector.broadcast %cst_9 : f32 to vector<16x512xf32>
      %c0_10 = arith.constant 0 : index
      %c0_11 = arith.constant 0 : index
      %13 = vector.load %arg6[%c0_10, %c0_11] : memref<16x512xf32, #tpu.memory_space<vmem>>, vector<16x512xf32>
      tpu.vector_store %arg6[%c0_10, %c0_11], %12 {strides = array<i32>} : memref<16x512xf32, #tpu.memory_space<vmem>>, vector<16x512xf32>,
    } else {
    }
    %c0 = arith.constant 0 : index
    %c0_1 = arith.constant 0 : index
    %3 = vector.load %arg6[%c0, %c0_1] : memref<16x512xf32, #tpu.memory_space<vmem>>, vector<16x512xf32>
    %c0_2 = arith.constant 0 : index
    %c0_3 = arith.constant 0 : index
    %4 = vector.load %arg2[%c0_2, %c0_3] : memref<16x512xbf16, #tpu.memory_space<vmem>>, vector<16x512xbf16>
    %c0_4 = arith.constant 0 : index
    %c0_5 = arith.constant 0 : index
    %5 = vector.load %arg3[%c0_4, %c0_5] : memref<512x512xbf16, #tpu.memory_space<vmem>>, vector<512x512xbf16>
    %cst = arith.constant dense<0.000000e+00> : vector<16x512xf32>
    %6 = tpu.matmul %4, %5, %cst {dimension_numbers = #tpu.dot_dimension_numbers<[1], [0], [0], [1], [0, 0, 1, 1], [], []>} : vector<16x512xbf16>, vector<512x512xbf16>, vector<16x512xf32> -> vector<16x512xf32>
    %7 = arith.addf %3, %6 : vector<16x512xf32>
    %c0_6 = arith.constant 0 : index
    %c0_7 = arith.constant 0 : index
    %8 = vector.load %arg6[%c0_6, %c0_7] : memref<16x512xf32, #tpu.memory_space<vmem>>, vector<16x512xf32>
    tpu.vector_store %arg6[%c0_6, %c0_7], %7 {strides = array<i32>} : memref<16x512xf32, #tpu.memory_space<vmem>>, vector<16x512xf32>,
    %c48_i32 = arith.constant 48 : i32
    %9 = arith.cmpi eq, %arg1, %c48_i32 : i32
    %10 = arith.extui %9 : i1 to i32
    %c0_i32_8 = arith.constant 0 : i32
    %11 = arith.cmpi ne, %10, %c0_i32_8 : i32
    scf.if %11 {
      %c0_9 = arith.constant 0 : index
      %c0_10 = arith.constant 0 : index
      %12 = vector.load %arg6[%c0_9, %c0_10] : memref<16x512xf32, #tpu.memory_space<vmem>>, vector<16x512xf32>
      %c0_11 = arith.constant 0 : index
      %c0_12 = arith.constant 0 : index
      %13 = vector.load %arg4[%c0_11, %c0_12] : memref<1x512xf32, #tpu.memory_space<vmem>>, vector<1x512xf32>
      %14 = vector.broadcast %13 : vector<1x512xf32> to vector<16x512xf32>
      %15 = arith.addf %12, %14 : vector<16x512xf32>
      %cst_13 = arith.constant 0.000000e+00 : f32
      %16 = vector.broadcast %cst_13 : f32 to vector<16x512xf32>
      %17 = arith.maximumf %15, %16 : vector<16x512xf32>
      %c0_14 = arith.constant 0 : index
      %c0_15 = arith.constant 0 : index
      %18 = vector.load %arg5[%c0_14, %c0_15] : memref<16x512xf32, #tpu.memory_space<vmem>>, vector<16x512xf32>
      tpu.vector_store %arg5[%c0_14, %c0_15], %17 {strides = array<i32>} : memref<16x512xf32, #tpu.memory_space<vmem>>, vector<16x512xf32>,
    } else {
    }
    return
  }
  func.func @transform_0(%arg0: i32, %arg1: i32) -> (i32, i32) {
    %c0_i32 = arith.constant 0 : i32
    %c0_i32_0 = arith.constant 0 : i32
    return %c0_i32, %arg1 : i32, i32
  }
  func.func @transform_1(%arg0: i32, %arg1: i32) -> (i32, i32) {
    %c0_i32 = arith.constant 0 : i32
    return %arg1, %arg0 : i32, i32
  }
  func.func @transform_2(%arg0: i32, %arg1: i32) -> (i32, i32) {
    %c0_i32 = arith.constant 0 : i32
    %c0_i32_0 = arith.constant 0 : i32
    return %c0_i32, %arg0 : i32, i32
  }
  func.func @transform_3(%arg0: i32, %arg1: i32) -> (i32, i32) {
    %c0_i32 = arith.constant 0 : i32
    %c0_i32_0 = arith.constant 0 : i32
    return %c0_i32, %arg0 : i32, i32
  }
}

module attributes {stable_mosaic.version = 11 : i64} {
  func.func @_linear_kernel(%arg0: i32, %arg1: i32, %arg2: memref<16x512xbf16, #tpu.memory_space<vmem>>, %arg3: memref<512x512xbf16, #tpu.memory_space<vmem>>, %arg4: memref<1x512xf32, #tpu.memory_space<vmem>>, %arg5: memref<16x512xf32, #tpu.memory_space<vmem>>, %arg6: memref<16x512xf32, #tpu.memory_space<vmem>>) attributes {dimension_semantics = [#tpu.dimension_semantics<parallel>, #tpu.dimension_semantics<arbitrary>], iteration_bounds = array<i64: 8, 8>, scalar_prefetch = 0 : i64, scratch_operands = 1 : i64, tpu.core_type = #tpu.core_type<tc>, window_params = [{transform_indices = @transform_0, window_bounds = array<i64: 16, 512>}, {transform_indices = @transform_1, window_bounds = array<i64: 512, 512>}, {transform_indices = @transform_2, window_bounds = array<i64: 1, 512>}, {transform_indices = @transform_3, window_bounds = array<i64: 16, 512>}]} {
    %c0_i32 = arith.constant 0 : i32
    %0 = arith.cmpi eq, %arg1, %c0_i32 : i32
    %1 = arith.extui %0 : i1 to i32
    %c0_i32_0 = arith.constant 0 : i32
    %2 = arith.cmpi ne, %1, %c0_i32_0 : i32
    scf.if %2 {
      %cst_9 = arith.constant 0.000000e+00 : f32
      %12 = vector.broadcast %cst_9 : f32 to vector<16x512xf32>
      %c0_10 = arith.constant 0 : index
      %c0_11 = arith.constant 0 : index
      %13 = vector.load %arg6[%c0_10, %c0_11] : memref<16x512xf32, #tpu.memory_space<vmem>>, vector<16x512xf32>
      tpu.vector_store %arg6[%c0_10, %c0_11], %12 {strides = array<i32>} : memref<16x512xf32, #tpu.memory_space<vmem>>, vector<16x512xf32>,
    } else {
    }
    %c0 = arith.constant 0 : index
    %c0_1 = arith.constant 0 : index
    %3 = vector.load %arg6[%c0, %c0_1] : memref<16x512xf32, #tpu.memory_space<vmem>>, vector<16x512xf32>
    %c0_2 = arith.constant 0 : index
    %c0_3 = arith.constant 0 : index
    %4 = vector.load %arg2[%c0_2, %c0_3] : memref<16x512xbf16, #tpu.memory_space<vmem>>, vector<16x512xbf16>
    %c0_4 = arith.constant 0 : index
    %c0_5 = arith.constant 0 : index
    %5 = vector.load %arg3[%c0_4, %c0_5] : memref<512x512xbf16, #tpu.memory_space<vmem>>, vector<512x512xbf16>
    %cst = arith.constant dense<0.000000e+00> : vector<16x512xf32>
    %6 = tpu.matmul %4, %5, %cst {dimension_numbers = #tpu.dot_dimension_numbers<[1], [0], [0], [1], [0, 0, 1, 1], [], []>} : vector<16x512xbf16>, vector<512x512xbf16>, vector<16x512xf32> -> vector<16x512xf32>
    %7 = arith.addf %3, %6 : vector<16x512xf32>
    %c0_6 = arith.constant 0 : index
    %c0_7 = arith.constant 0 : index
    %8 = vector.load %arg6[%c0_6, %c0_7] : memref<16x512xf32, #tpu.memory_space<vmem>>, vector<16x512xf32>
    tpu.vector_store %arg6[%c0_6, %c0_7], %7 {strides = array<i32>} : memref<16x512xf32, #tpu.memory_space<vmem>>, vector<16x512xf32>,
    %c7_i32 = arith.constant 7 : i32
    %9 = arith.cmpi eq, %arg1, %c7_i32 : i32
    %10 = arith.extui %9 : i1 to i32
    %c0_i32_8 = arith.constant 0 : i32
    %11 = arith.cmpi ne, %10, %c0_i32_8 : i32
    scf.if %11 {
      %c0_9 = arith.constant 0 : index
      %c0_10 = arith.constant 0 : index
      %12 = vector.load %arg6[%c0_9, %c0_10] : memref<16x512xf32, #tpu.memory_space<vmem>>, vector<16x512xf32>
      %c0_11 = arith.constant 0 : index
      %c0_12 = arith.constant 0 : index
      %13 = vector.load %arg4[%c0_11, %c0_12] : memref<1x512xf32, #tpu.memory_space<vmem>>, vector<1x512xf32>
      %14 = vector.broadcast %13 : vector<1x512xf32> to vector<16x512xf32>
      %15 = arith.addf %12, %14 : vector<16x512xf32>
      %cst_13 = arith.constant 0.000000e+00 : f32
      %16 = vector.broadcast %cst_13 : f32 to vector<16x512xf32>
      %17 = arith.maximumf %15, %16 : vector<16x512xf32>
      %c0_14 = arith.constant 0 : index
      %c0_15 = arith.constant 0 : index
      %18 = vector.load %arg5[%c0_14, %c0_15] : memref<16x512xf32, #tpu.memory_space<vmem>>, vector<16x512xf32>
      tpu.vector_store %arg5[%c0_14, %c0_15], %17 {strides = array<i32>} : memref<16x512xf32, #tpu.memory_space<vmem>>, vector<16x512xf32>,
    } else {
    }
    return
  }
  func.func @transform_0(%arg0: i32, %arg1: i32) -> (i32, i32) {
    %c0_i32 = arith.constant 0 : i32
    %c0_i32_0 = arith.constant 0 : i32
    return %c0_i32, %arg1 : i32, i32
  }
  func.func @transform_1(%arg0: i32, %arg1: i32) -> (i32, i32) {
    %c0_i32 = arith.constant 0 : i32
    return %arg1, %arg0 : i32, i32
  }
  func.func @transform_2(%arg0: i32, %arg1: i32) -> (i32, i32) {
    %c0_i32 = arith.constant 0 : i32
    %c0_i32_0 = arith.constant 0 : i32
    return %c0_i32, %arg0 : i32, i32
  }
  func.func @transform_3(%arg0: i32, %arg1: i32) -> (i32, i32) {
    %c0_i32 = arith.constant 0 : i32
    %c0_i32_0 = arith.constant 0 : i32
    return %c0_i32, %arg0 : i32, i32
  }
}

module attributes {stable_mosaic.version = 11 : i64} {
  func.func @_linear_kernel(%arg0: i32, %arg1: i32, %arg2: memref<16x512xbf16, #tpu.memory_space<vmem>>, %arg3: memref<512x128xbf16, #tpu.memory_space<vmem>>, %arg4: memref<1x128xf32, #tpu.memory_space<vmem>>, %arg5: memref<16x128xf32, #tpu.memory_space<vmem>>, %arg6: memref<16x128xf32, #tpu.memory_space<vmem>>) attributes {dimension_semantics = [#tpu.dimension_semantics<parallel>, #tpu.dimension_semantics<arbitrary>], iteration_bounds = array<i64: 1, 8>, scalar_prefetch = 0 : i64, scratch_operands = 1 : i64, tpu.core_type = #tpu.core_type<tc>, window_params = [{transform_indices = @transform_0, window_bounds = array<i64: 16, 512>}, {transform_indices = @transform_1, window_bounds = array<i64: 512, 128>}, {transform_indices = @transform_2, window_bounds = array<i64: 1, 128>}, {transform_indices = @transform_3, window_bounds = array<i64: 16, 128>}]} {
    %c0_i32 = arith.constant 0 : i32
    %0 = arith.cmpi eq, %arg1, %c0_i32 : i32
    %1 = arith.extui %0 : i1 to i32
    %c0_i32_0 = arith.constant 0 : i32
    %2 = arith.cmpi ne, %1, %c0_i32_0 : i32
    scf.if %2 {
      %cst_9 = arith.constant 0.000000e+00 : f32
      %12 = vector.broadcast %cst_9 : f32 to vector<16x128xf32>
      %c0_10 = arith.constant 0 : index
      %c0_11 = arith.constant 0 : index
      %13 = vector.load %arg6[%c0_10, %c0_11] : memref<16x128xf32, #tpu.memory_space<vmem>>, vector<16x128xf32>
      tpu.vector_store %arg6[%c0_10, %c0_11], %12 {strides = array<i32>} : memref<16x128xf32, #tpu.memory_space<vmem>>, vector<16x128xf32>,
    } else {
    }
    %c0 = arith.constant 0 : index
    %c0_1 = arith.constant 0 : index
    %3 = vector.load %arg6[%c0, %c0_1] : memref<16x128xf32, #tpu.memory_space<vmem>>, vector<16x128xf32>
    %c0_2 = arith.constant 0 : index
    %c0_3 = arith.constant 0 : index
    %4 = vector.load %arg2[%c0_2, %c0_3] : memref<16x512xbf16, #tpu.memory_space<vmem>>, vector<16x512xbf16>
    %c0_4 = arith.constant 0 : index
    %c0_5 = arith.constant 0 : index
    %5 = vector.load %arg3[%c0_4, %c0_5] : memref<512x128xbf16, #tpu.memory_space<vmem>>, vector<512x128xbf16>
    %cst = arith.constant dense<0.000000e+00> : vector<16x128xf32>
    %6 = tpu.matmul %4, %5, %cst {dimension_numbers = #tpu.dot_dimension_numbers<[1], [0], [0], [1], [0, 0, 1, 1], [], []>} : vector<16x512xbf16>, vector<512x128xbf16>, vector<16x128xf32> -> vector<16x128xf32>
    %7 = arith.addf %3, %6 : vector<16x128xf32>
    %c0_6 = arith.constant 0 : index
    %c0_7 = arith.constant 0 : index
    %8 = vector.load %arg6[%c0_6, %c0_7] : memref<16x128xf32, #tpu.memory_space<vmem>>, vector<16x128xf32>
    tpu.vector_store %arg6[%c0_6, %c0_7], %7 {strides = array<i32>} : memref<16x128xf32, #tpu.memory_space<vmem>>, vector<16x128xf32>,
    %c7_i32 = arith.constant 7 : i32
    %9 = arith.cmpi eq, %arg1, %c7_i32 : i32
    %10 = arith.extui %9 : i1 to i32
    %c0_i32_8 = arith.constant 0 : i32
    %11 = arith.cmpi ne, %10, %c0_i32_8 : i32
    scf.if %11 {
      %c0_9 = arith.constant 0 : index
      %c0_10 = arith.constant 0 : index
      %12 = vector.load %arg6[%c0_9, %c0_10] : memref<16x128xf32, #tpu.memory_space<vmem>>, vector<16x128xf32>
      %c0_11 = arith.constant 0 : index
      %c0_12 = arith.constant 0 : index
      %13 = vector.load %arg4[%c0_11, %c0_12] : memref<1x128xf32, #tpu.memory_space<vmem>>, vector<1x128xf32>
      %14 = vector.broadcast %13 : vector<1x128xf32> to vector<16x128xf32>
      %15 = arith.addf %12, %14 : vector<16x128xf32>
      %c0_13 = arith.constant 0 : index
      %c0_14 = arith.constant 0 : index
      %16 = vector.load %arg5[%c0_13, %c0_14] : memref<16x128xf32, #tpu.memory_space<vmem>>, vector<16x128xf32>
      tpu.vector_store %arg5[%c0_13, %c0_14], %15 {strides = array<i32>} : memref<16x128xf32, #tpu.memory_space<vmem>>, vector<16x128xf32>,
    } else {
    }
    return
  }
  func.func @transform_0(%arg0: i32, %arg1: i32) -> (i32, i32) {
    %c0_i32 = arith.constant 0 : i32
    %c0_i32_0 = arith.constant 0 : i32
    return %c0_i32, %arg1 : i32, i32
  }
  func.func @transform_1(%arg0: i32, %arg1: i32) -> (i32, i32) {
    %c0_i32 = arith.constant 0 : i32
    return %arg1, %arg0 : i32, i32
  }
  func.func @transform_2(%arg0: i32, %arg1: i32) -> (i32, i32) {
    %c0_i32 = arith.constant 0 : i32
    %c0_i32_0 = arith.constant 0 : i32
    return %c0_i32, %arg0 : i32, i32
  }
  func.func @transform_3(%arg0: i32, %arg1: i32) -> (i32, i32) {
    %c0_i32 = arith.constant 0 : i32
    %c0_i32_0 = arith.constant 0 : i32
    return %c0_i32, %arg0 : i32, i32
  }
}

</mosaic_0001>

<bundles_post_ra>
// kernel: _head_forward.3
= control target key start
LH: loop header
LB: loop body
LE: loop exit
PB: predicated region body
PF: predicated region fallthrough
CT: control target
= control target key end

     0   :  { %s2467_s0 = inlined_call_operand.vmem [shape: bf16[16,25088], index: 0, kind: input, shape index: {}]   ;;  %s2468_s1 = inlined_call_operand.hbm [shape: bf16[25088,4096], index: 1, kind: input, shape index: {}]   ;;  %s2469_s2 = inlined_call_operand.vmem [shape: f32[1,4096], index: 2, kind: input, shape index: {}]   ;;  %s2470_s3 = inlined_call_operand.vmem [shape: f32[16,4096], index: 3, kind: output, shape index: {}]  }
   0x1   :  { %2474 = sst [smem:[#allocation12_spill]] %s2467_s0 }
   0x2   :  { %8 = vsyncpa [#allocation5], 0 }
   0x3   :  { %10 = vsyncpa [#allocation5 + $0x1], 0  ;;  %s2093_s12 = smov 0   ;;  %s2095_s13 = smov 0  }
   0x4   :  { %s2097_s14 = smov 0   ;;  %s2099_s15 = smov 0  }
   0x5   :  { %s2101_s16 = smov 0   ;;  %s2103_s17 = smov 0  }
   0x6   :  { %s2105_s18 = smov 0   ;;  %s2107_s19 = smov 0  }
   0x7   :  { %s2109_s20 = smov 0   ;;  %s2111_s21 = smov 0  }
   0x8   :  { %s2113_s22 = smov 0   ;;  %s2115_s23 = smov 0  }
   0x9 LB: > { %2475 = sst [smem:[#allocation8_spill]] %s2062_s22  ;;  %s1473_s24 = sadd.s32 4294967295, %s2066_s23   ;;  %s2066_s23 = sphi %s2115_s23, %s16_s23   ;;  %s2062_s22 = sphi %s2113_s22, %s2488_s22   ;;  %s2058_s21 = sphi %s2111_s21, %s2498_s21   ;;  %s2054_s20 = sphi %s2109_s20, %s2497_s20   ;;  %s2050_s19 = sphi %s2107_s19, %s2496_s19   ;;  %s2046_s18 = sphi %s2105_s18, %s2495_s18   ;;  %s2042_s17 = sphi %s2103_s17, %s2494_s17   ;;  %s2038_s16 = sphi %s2101_s16, %s2493_s16   ;;  %s2034_s15 = sphi %s2099_s15, %s2492_s15   ;;  %s2030_s14 = sphi %s2097_s14, %s2491_s14   ;;  %s2026_s13 = sphi %s2095_s13, %s2490_s13   ;;  %s2022_s12 = sphi %s2093_s12, %s2489_s12  }
   0xa   : > { %s25_s25 = sadd.s32 1, %s2058_s21  ;;  %s28_s26 = sadd.s32 1, %s2062_s22 }
   0xb   : > { %p26_p0 = scmp.ge.s32.totalorder %s25_s25, 49  ;;  %s35_s27 = sadd.s32 1, %s2046_s18 }
   0xc   : > { %p42_p1 = scmp.ne.s32.totalorder %s2046_s18, %s2042_s17  ;;  %p43_p2 = scmp.eq.s32.totalorder %s2066_s23, 0 }
   0xd   : > { %s2500_s25 = smov (%p26_p0, %s25_s25), 0  ;;  %s2502_s26 = smov (!%p26_p0, %s28_s26), %s2062_s22 }
   0xe   : > { %2476 = sst [smem:[#allocation9_spill]] %s2500_s25  ;;  %s32_s28 = ssub.s32 %s2058_s21, %s2500_s25 }
   0xf   : > { %p30_p3 = scmp.ge.s32.totalorder %s2502_s26, 8  ;;  %p33_p4 = scmp.eq.s32.totalorder %s32_s28, 0 }
  0x10   : > { %p2165_p5 = por %p43_p2, %p42_p1  ;;  %s63_s30 = sadd.s32 1, %s2038_s16 }
  0x11   : > { %s2504_s26 = smov (%p30_p3, %s2502_s26), 0  ;;  %p70_p6 = scmp.ne.s32.totalorder %s2038_s16, %s2034_s15 }
  0x12   : > { %2478 = sst [smem:[#allocation10_spill]] %s2504_s26  ;;  %s59_s5 = ssub.s32 %s2062_s22, %s2504_s26 }
  0x13   : > { %s2173_s4 = scalar_select %p33_p4, %s2046_s18, %s35_s27  }
  0x14   : > { %s60_s6 = sor.u32 %s59_s5, %s32_s28  ;;  %p76_p7 = scmp.ne.s32.totalorder %s2034_s15, %s2030_s14 }
  0x15   : > { %2479 = sst [smem:[#allocation11_spill]] %s2173_s4  ;;  %p61_p8 = scmp.eq.s32.totalorder %s60_s6, 0 }
  0x16   : > { %p2181_p9 = por %p70_p6, %p43_p2  ;;  %p77_p10 = scmp.eq.s32.totalorder %s1473_s24, 0 }
  0x17   : > { %p113_p11 = scmp.eq.s32.totalorder %s59_s5, 0  ;;  %s115_s10 = sadd.s32 1, %s2026_s13 }
  0x18   : > { %s2188_s8 = scalar_select %p61_p8, %s2038_s16, %s63_s30  }
  0x19   : > { %p2190_p12 = por %p77_p10, %p76_p7  ;;  %p125_p13 = scmp.ne.s32.totalorder %s2026_s13, %s2022_s12 }
  0x1a   : > { %s2196_s11 = scalar_select %p113_p11, %s2026_s13, %s115_s10  }
  0x1b   : > { %p126_p0 = scmp.eq.s32.totalorder %s1473_s24, 391  ;;  %p1476_p2 = scmp.ge.s32.totalorder %s2066_s23, 392 }
  0x1d   : > { %p2202_p1 = por %p126_p0, %p125_p13  ;;  %148 = sbr.rel (%p1476_p2) target bundleno = 77 (0x4d), region = 16 }
  0x1f   : > { %s2482_s14 = scalar_select %p2202_p1, 1, 0 }
  0x24   : > { %151 = sbr.rel (!%p2165_p5) target bundleno = 48 (0x30), region = 20  ;;  %s153_s27 = sand.u32 (%p2165_p5), 1, %s2046_s18  }
  0x25   : > { %s1629_s28 = sshll.u32 (%p2165_p5), %s2058_s21, 4  ;;  %s1477_s30 = sshll.u32 (%p2165_p5), %s153_s27, 5 }
  0x26   : > { %s2483_s0 = sld [smem:[#allocation12_spill]] (%p2165_p5)  ;;  %s155_s24 = scalar_lea.vmem (%p2165_p5), [#allocation3], %s1477_s30 }
  0x2c   : > { %s158_s10 = scalar_lea.vmem %s2483_s0, %s1629_s28 }
  0x2d   : > { %v171_v0 = vld [vmem:[%s158_s10] sm:$0xff]  ;;  %v173_v1 = vld [vmem:[%s158_s10 + $0x8] sm:$0xff]  ;;  %v175_v2 = vld [vmem:[%s158_s10 + $0x310] sm:$0xff] }
  0x2e   : > { %172 = vst [vmem:[%s155_s24] sm:$0xff] %v171_v0  ;;  %174 = vst [vmem:[%s155_s24 + $0x8] sm:$0xff] %v173_v1  ;;  %v177_v3 = vld [vmem:[%s158_s10 + $0x318] sm:$0xff] }
  0x2f   : > { %176 = vst [vmem:[%s155_s24 + $0x10] sm:$0xff] %v175_v2  ;;  %178 = vst [vmem:[%s155_s24 + $0x18] sm:$0xff] %v177_v3 }
  0x30 PF: > { %s185_s29 = sand.u32 1, %s2038_s16   ;;  %s1482_s27 = sshll.u32 %s2062_s22, 2 }
  0x31   : > { %s1480_s26 = sshll.u32 %s185_s29, 10  ;;  %s1630_s25 = sshll.u32 %s2058_s21, 11 }
  0x32   : > { %s196_s5 = sadd.s32 %s1630_s25, %s1482_s27  ;;  %s189_s28 = scalar_lea.vmem [#allocation4], %s1480_s26 }
  0x33   : > { %s199_s6 = sshll.u32 %s189_s28, 4  ;;  %s1484_s0 = sshll.u32 %s196_s5, 6  ;;  %s2217_s6 = int_to_ptr.vmem [resolvable:$true] %s199_s6 }
  0x34   : > { %s2222_s10 = scalar_lea.hbm %s2468_s1, %s1484_s0  ;;  %s2224_s24 = scalar_lea.sflag [#allocation5], %s185_s29 }
  0x35   : > { %s1940_s22 = scalar_lea.hbm %s2222_s10, 16384  ;;  %s1944_s27 = scalar_lea.hbm %s2468_s1, 6422528 }
  0x36   : > { %p1941_p3 = scmp.ne.s32.totalorder %s2222_s10, %s1940_s22  ;;  %p1945_p6 = scmp.lt.u32.totalorder %s2222_s10, %s2468_s1 }
  0x37   : > { %p1946_p7 = scmp.lt.u32.totalorder %s1944_s27, %s1940_s22  ;;  %p1948_p10 = scmp.lt.u32.totalorder %s1940_s22, %s2222_s10 }
  0x38   : > { %p1942_p4 = pnand %p1941_p3, %p2181_p9 }
  0x39   : > { %p1947_p8 = por %p1946_p7, %p1945_p6 }
  0x3a   : > { %p1943_p5 = pneg %p1942_p4 }
  0x3b   : > { %p1949_p11 = por %p1948_p10, %p1947_p8 }
  0x3d   : > { %p1950_p13 = pnand %p1949_p11, %p1943_p5 }
  0x3f   : > { %1953 = shalt.err (!%p1950_p13)
}
  0x40   : > { %s1954_s0 = scalar_lea.vmem %s2217_s6, 16384  ;;  %s2068_s4 = smov [#allocation4]  }
  0x41   : > { %p1955_p0 = scmp.ne.s32.totalorder %s2217_s6, %s1954_s0  ;;  %s1958_s29 = sshll.u32 %s2068_s4, 4  ;;  %s1959_s29 = int_to_ptr.vmem [resolvable:$false] %s1958_s29 }
  0x42   : > { %s1960_s30 = scalar_lea.vmem %s1959_s29, 32768  ;;  %p1961_p4 = scmp.lt.s32.totalorder %s2217_s6, %s1959_s29 }
  0x43   : > { %p1956_p2 = pnand %p1955_p0, %p2181_p9  ;;  %p1962_p1 = scmp.lt.s32.totalorder %s1960_s30, %s1954_s0 }
  0x45   : > { %p1957_p3 = pneg %p1956_p2  ;;  %p1963_p6 = por %p1962_p1, %p1961_p4 }
  0x47   : > { %p1964_p7 = pnand %p1963_p6, %p1957_p3 }
  0x49   : > { %1967 = shalt.err (!%p1964_p7)
}
  0x4a   : > { %s2069_s22 = smov 2048   ;;  %s2070_s25 = smov 256  }
  0x4b   : > { %s2071_s26 = smov 16  }
  0x4c   : > { %1640 = dma.hbm_to_vmem [thread:$0]  (%p2181_p9), %s2222_s10, 16384, %s2217_s6, %s2224_s24, %s2069_s22, %s2070_s25, %s2071_s26  }
  0x4d PF: > { %p1485_p5 = scmp.ge.s32.totalorder %s2066_s23, 1  ;;  %p215_p8 = scmp.lt.s32.totalorder %s2066_s23, 393 }
  0x4f   : > { %p216_p10 = pnand %p1485_p5, %p215_p8 }
  0x50   : > { %s222_s27 = sand.u32 (!%p216_p10), 1, %s2042_s17   ;;  %s228_s5 = sand.u32 (!%p216_p10), 1, %s2034_s15  }
  0x51   : > { %219 = sbr.rel (%p216_p10) target bundleno = 468 (0x1d4), region = 51  ;;  %s1486_s28 = sshll.u32 (!%p216_p10), %s222_s27, 5 }
  0x52   : > { %s1487_s0 = sshll.u32 (!%p216_p10), %s228_s5, 10  ;;  %s2252_s4 = scalar_lea.vmem (!%p216_p10), [#allocation3], %s1486_s28 }
  0x53   : > { %s229_s29 = scalar_lea.sflag (!%p216_p10), [#allocation5], %s228_s5  ;;  %s2254_s30 = scalar_lea.vmem (!%p216_p10), [#allocation4], %s1487_s0 }
  0x58   : > { %2017 = dma.done.wait (%p2190_p12), %s229_s29, 16384  }
  0x59   : > { %2019 = vsyncadd (%p2190_p12), %s229_s29, 4294950912  ;;  %s259_s7 = sand.u32 1, %s2022_s12   ;;  %s1489_s6 = sshll.u32 %s2054_s20, 2 }
  0x5a   : > { %s1488_s10 = sshll.u32 %s259_s7, 6  ;;  %p266_p9 = scmp.lt.s32.totalorder %s1489_s6, 31 }
  0x5b   : > { %s2268_s25 = scalar_lea.vmem [#allocation6], %s1488_s10  ;;  %p1490_p1 = scmp.ne.s32.totalorder %s2050_s19, 0 }
  0x5c   : > { %s2506_s6 = smov (!%p266_p9, %s1489_s6), 31  ;;  %v2072_v4 = vmov (!%p1490_p1), 0.0  }
  0x5d   : > { %s268_s22 = scalar_lea.vmem %s2469_s2, %s2506_s6  ;;  %274 = sbr.rel (%p1490_p1) target bundleno = 100 (0x64), region = 63  ;;  %275 = vst [vmem:[#allocation2] sm:$0xff] (!%p1490_p1), %v2072_v4  ;;  %276 = vst [vmem:[#allocation2 + $0x8] sm:$0xff] (!%p1490_p1), %v2072_v4 }
  0x5e   : > { %277 = vst [vmem:[#allocation2 + $0x10] sm:$0xff] (!%p1490_p1), %v2072_v4  ;;  %278 = vst [vmem:[#allocation2 + $0x18] sm:$0xff] (!%p1490_p1), %v2072_v4 }
  0x5f   : > { %279 = vst [vmem:[#allocation2 + $0x20] sm:$0xff] (!%p1490_p1), %v2072_v4  ;;  %280 = vst [vmem:[#allocation2 + $0x28] sm:$0xff] (!%p1490_p1), %v2072_v4 }
  0x60   : > { %281 = vst [vmem:[#allocation2 + $0x30] sm:$0xff] (!%p1490_p1), %v2072_v4  ;;  %282 = vst [vmem:[#allocation2 + $0x38] sm:$0xff] (!%p1490_p1), %v2072_v4 }
  0x64 PF: > { %v1742_v5 = vld [vmem:[%s2254_s30 + $0x4] ss:$16 sps:$4 sm:$0xff]   ;;  %v1744_v6 = vld [vmem:[%s2254_s30 + $0xc] ss:$16 sps:$4 sm:$0xff]   ;;  %v1746_v7 = vld [vmem:[%s2254_s30] ss:$16 sps:$4 sm:$0xff]  }
  0x65   : > { %1083 = vmatprep.subr.bf16.mxu0 %v1742_v5  ;;  %v1747_v8 = vld [vmem:[%s2254_s30 + $0x8] ss:$16 sps:$4 sm:$0xff]   ;;  %1169 = vmatprep.subr.bf16.mxu1 %v1744_v6  ;;  %v1748_v9 = vld [vmem:[%s2254_s30 + $0x24] ss:$16 sps:$4 sm:$0xff]   ;;  %v1750_v10 = vld [vmem:[%s2254_s30 + $0x2c] ss:$16 sps:$4 sm:$0xff]  }
  0x66   : > { %1084 = vmatpush1.bf16.msra.mxu0 %v1746_v7  ;;  %1170 = vmatpush1.bf16.msra.mxu1 %v1747_v8  ;;  %v1752_v11 = vld [vmem:[%s2254_s30 + $0x20] ss:$16 sps:$4 sm:$0xff]   ;;  %v1753_v12 = vld [vmem:[%s2254_s30 + $0x28] ss:$16 sps:$4 sm:$0xff]   ;;  %v1754_v13 = vld [vmem:[%s2254_s30 + $0x44] ss:$16 sps:$4 sm:$0xff]  }
  0x67   : > { %1085 = vmatprep.subr.bf16.mxu0 %v1748_v9  ;;  %1171 = vmatprep.subr.bf16.mxu1 %v1750_v10  ;;  %v1756_v14 = vld [vmem:[%s2254_s30 + $0x4c] ss:$16 sps:$4 sm:$0xff]   ;;  %v1758_v15 = vld [vmem:[%s2254_s30 + $0x40] ss:$16 sps:$4 sm:$0xff]   ;;  %v1759_v16 = vld [vmem:[%s2254_s30 + $0x48] ss:$16 sps:$4 sm:$0xff]  }
  0x68   : > { %v1760_v17 = vld [vmem:[%s2254_s30 + $0x64] ss:$16 sps:$4 sm:$0xff]   ;;  %v1762_v18 = vld [vmem:[%s2254_s30 + $0x6c] ss:$16 sps:$4 sm:$0xff]   ;;  %v1764_v19 = vld [vmem:[%s2254_s30 + $0x60] ss:$16 sps:$4 sm:$0xff]  }
  0x69   : > { %v1765_v20 = vld [vmem:[%s2254_s30 + $0x68] ss:$16 sps:$4 sm:$0xff]   ;;  %v1766_v21 = vld [vmem:[%s2254_s30 + $0x84] ss:$16 sps:$4 sm:$0xff]   ;;  %v1768_v22 = vld [vmem:[%s2254_s30 + $0x8c] ss:$16 sps:$4 sm:$0xff]  }
  0x6a   : > { %1086 = vmatpush1.bf16.msra.mxu0 %v1752_v11  ;;  %1172 = vmatpush1.bf16.msra.mxu1 %v1753_v12  ;;  %v1770_v23 = vld [vmem:[%s2254_s30 + $0x80] ss:$16 sps:$4 sm:$0xff]   ;;  %v1771_v24 = vld [vmem:[%s2254_s30 + $0x88] ss:$16 sps:$4 sm:$0xff]   ;;  %v1772_v25 = vld [vmem:[%s2254_s30 + $0xa4] ss:$16 sps:$4 sm:$0xff]  }
  0x6b   : > { %1087 = vmatprep.subr.bf16.mxu0 %v1754_v13  ;;  %1173 = vmatprep.subr.bf16.mxu1 %v1756_v14  ;;  %v1774_v26 = vld [vmem:[%s2254_s30 + $0xac] ss:$16 sps:$4 sm:$0xff]   ;;  %v1776_v27 = vld [vmem:[%s2254_s30 + $0xa0] ss:$16 sps:$4 sm:$0xff]   ;;  %v1777_v28 = vld [vmem:[%s2254_s30 + $0xa8] ss:$16 sps:$4 sm:$0xff]  }
  0x6c   : > { %v1778_v29 = vld [vmem:[%s2254_s30 + $0xc4] ss:$16 sps:$4 sm:$0xff]   ;;  %v1780_v30 = vld [vmem:[%s2254_s30 + $0xcc] ss:$16 sps:$4 sm:$0xff]   ;;  %v1782_v31 = vld [vmem:[%s2254_s30 + $0xc0] ss:$16 sps:$4 sm:$0xff]  }
  0x6d   : > { %v1783_v32 = vld [vmem:[%s2254_s30 + $0xc8] ss:$16 sps:$4 sm:$0xff]   ;;  %v1784_v33 = vld [vmem:[%s2254_s30 + $0xe4] ss:$16 sps:$4 sm:$0xff]   ;;  %v1786_v34 = vld [vmem:[%s2254_s30 + $0xec] ss:$16 sps:$4 sm:$0xff]  }
  0x6e   : > { %1088 = vmatpush1.bf16.msra.mxu0 %v1758_v15  ;;  %1174 = vmatpush1.bf16.msra.mxu1 %v1759_v16  ;;  %v1788_v35 = vld [vmem:[%s2254_s30 + $0xe0] ss:$16 sps:$4 sm:$0xff]   ;;  %v1789_v36 = vld [vmem:[%s2254_s30 + $0xe8] ss:$16 sps:$4 sm:$0xff]   ;;  %v1790_v37 = vld [vmem:[%s2254_s30 + $0x104] ss:$16 sps:$4 sm:$0xff]  }
  0x6f   : > { %1089 = vmatprep.subr.bf16.mxu0 %v1760_v17  ;;  %1175 = vmatprep.subr.bf16.mxu1 %v1762_v18  ;;  %v1792_v38 = vld [vmem:[%s2254_s30 + $0x10c] ss:$16 sps:$4 sm:$0xff]   ;;  %v1794_v39 = vld [vmem:[%s2254_s30 + $0x100] ss:$16 sps:$4 sm:$0xff]   ;;  %v1795_v40 = vld [vmem:[%s2254_s30 + $0x108] ss:$16 sps:$4 sm:$0xff]  }
  0x70   : > { %v1796_v41 = vld [vmem:[%s2254_s30 + $0x124] ss:$16 sps:$4 sm:$0xff]   ;;  %v1798_v42 = vld [vmem:[%s2254_s30 + $0x12c] ss:$16 sps:$4 sm:$0xff]   ;;  %v1800_v43 = vld [vmem:[%s2254_s30 + $0x120] ss:$16 sps:$4 sm:$0xff]  }
  0x71   : > { %v1801_v44 = vld [vmem:[%s2254_s30 + $0x128] ss:$16 sps:$4 sm:$0xff]   ;;  %v1802_v45 = vld [vmem:[%s2254_s30 + $0x144] ss:$16 sps:$4 sm:$0xff]   ;;  %v1804_v46 = vld [vmem:[%s2254_s30 + $0x14c] ss:$16 sps:$4 sm:$0xff]  }
  0x72   : > { %1090 = vmatpush1.bf16.msra.mxu0 %v1764_v19  ;;  %1176 = vmatpush1.bf16.msra.mxu1 %v1765_v20  ;;  %v1806_v47 = vld [vmem:[%s2254_s30 + $0x140] ss:$16 sps:$4 sm:$0xff]   ;;  %v1807_v48 = vld [vmem:[%s2254_s30 + $0x148] ss:$16 sps:$4 sm:$0xff]   ;;  %v1808_v49 = vld [vmem:[%s2254_s30 + $0x164] ss:$16 sps:$4 sm:$0xff]  }
  0x73   : > { %1091 = vmatprep.subr.bf16.mxu0 %v1766_v21  ;;  %1177 = vmatprep.subr.bf16.mxu1 %v1768_v22  ;;  %v1810_v50 = vld [vmem:[%s2254_s30 + $0x16c] ss:$16 sps:$4 sm:$0xff]   ;;  %v1812_v51 = vld [vmem:[%s2254_s30 + $0x160] ss:$16 sps:$4 sm:$0xff]   ;;  %v1813_v52 = vld [vmem:[%s2254_s30 + $0x168] ss:$16 sps:$4 sm:$0xff]  }
  0x74   : > { %v1840_v53 = vld [vmem:[%s2252_s4 + $0x4] ss:$16 sps:$4 sm:$0xff]   ;;  %v1816_v55 = vld [vmem:[%s2254_s30 + $0x18c] ss:$16 sps:$4 sm:$0xff]   ;;  %v1818_v56 = vld [vmem:[%s2254_s30 + $0x180] ss:$16 sps:$4 sm:$0xff]  }
  0x75   : > { %v1814_v54 = vld [vmem:[%s2254_s30 + $0x184] ss:$16 sps:$4 sm:$0xff]   ;;  %1115 = vmatprep.mubr.bf16.mxu0 %v1840_v53  ;;  %1201 = vmatprep.mubr.bf16.mxu1 %v1840_v53  ;;  %v1819_v57 = vld [vmem:[%s2254_s30 + $0x188] ss:$16 sps:$4 sm:$0xff]   ;;  %v1822_v59 = vld [vmem:[%s2254_s30 + $0x1ac] ss:$16 sps:$4 sm:$0xff]  }
  0x76   : > { %1092 = vmatpush1.bf16.msra.mxu0 %v1770_v23  ;;  %1178 = vmatpush1.bf16.msra.mxu1 %v1771_v24  ;;  %v1820_v58 = vld [vmem:[%s2254_s30 + $0x1a4] ss:$16 sps:$4 sm:$0xff]   ;;  %v1824_v60 = vld [vmem:[%s2254_s30 + $0x1a0] ss:$16 sps:$4 sm:$0xff]   ;;  %v1825_v61 = vld [vmem:[%s2254_s30 + $0x1a8] ss:$16 sps:$4 sm:$0xff]  }
  0x77   : > { %1093 = vmatprep.subr.bf16.mxu0 %v1772_v25  ;;  %1179 = vmatprep.subr.bf16.mxu1 %v1774_v26  ;;  %v1826_v62 = vld [vmem:[%s2254_s30 + $0x1c4] ss:$16 sps:$4 sm:$0xff]   ;;  %v1828_v63 = vld [vmem:[%s2254_s30 + $0x1cc] ss:$16 sps:$4 sm:$0xff]   ;;  %v1830_v0 = vld [vmem:[%s2254_s30 + $0x1c0] ss:$16 sps:$4 sm:$0xff]  }
  0x78   : > { %v1831_v1 = vld [vmem:[%s2254_s30 + $0x1c8] ss:$16 sps:$4 sm:$0xff]   ;;  %v1832_v2 = vld [vmem:[%s2254_s30 + $0x1e4] ss:$16 sps:$4 sm:$0xff]   ;;  %v1834_v3 = vld [vmem:[%s2254_s30 + $0x1ec] ss:$16 sps:$4 sm:$0xff]  }
  0x79   : > { %v1836_v4 = vld [vmem:[%s2254_s30 + $0x1e0] ss:$16 sps:$4 sm:$0xff]   ;;  %v1837_v5 = vld [vmem:[%s2254_s30 + $0x1e8] ss:$16 sps:$4 sm:$0xff]   ;;  %v1843_v6 = vld [vmem:[%s2254_s30 + $0x204] ss:$16 sps:$4 sm:$0xff]  }
  0x7a   : > { %1094 = vmatpush1.bf16.msra.mxu0 %v1776_v27  ;;  %1180 = vmatpush1.bf16.msra.mxu1 %v1777_v28  ;;  %v1846_v7 = vld [vmem:[%s2254_s30 + $0x20c] ss:$16 sps:$4 sm:$0xff]   ;;  %v1838_v8 = vld [vmem:[%s2252_s4] ss:$16 sps:$4 sm:$0xff]   ;;  %v1844_v10 = vld [vmem:[%s2254_s30 + $0x208] ss:$16 sps:$4 sm:$0xff]  }
  0x7b   : > { %1095 = vmatprep.subr.bf16.mxu0 %v1778_v29  ;;  %1181 = vmatprep.subr.bf16.mxu1 %v1780_v30  ;;  %v1841_v9 = vld [vmem:[%s2254_s30 + $0x200] ss:$16 sps:$4 sm:$0xff]   ;;  %v1849_v11 = vld [vmem:[%s2254_s30 + $0x224] ss:$16 sps:$4 sm:$0xff]   ;;  %v1852_v12 = vld [vmem:[%s2254_s30 + $0x22c] ss:$16 sps:$4 sm:$0xff]  }
  0x7c   : > { %v1847_v13 = vld [vmem:[%s2254_s30 + $0x220] ss:$16 sps:$4 sm:$0xff]   ;;  %v1850_v14 = vld [vmem:[%s2254_s30 + $0x228] ss:$16 sps:$4 sm:$0xff]   ;;  %v1855_v15 = vld [vmem:[%s2254_s30 + $0x244] ss:$16 sps:$4 sm:$0xff]  }
  0x7d   : > { %v1858_v16 = vld [vmem:[%s2254_s30 + $0x24c] ss:$16 sps:$4 sm:$0xff]   ;;  %v1853_v17 = vld [vmem:[%s2254_s30 + $0x240] ss:$16 sps:$4 sm:$0xff]   ;;  %v1856_v18 = vld [vmem:[%s2254_s30 + $0x248] ss:$16 sps:$4 sm:$0xff]  }
  0x7e   : > { %1096 = vmatpush1.bf16.msra.mxu0 %v1782_v31  ;;  %1182 = vmatpush1.bf16.msra.mxu1 %v1783_v32  ;;  %v1861_v19 = vld [vmem:[%s2254_s30 + $0x264] ss:$16 sps:$4 sm:$0xff]   ;;  %v1864_v20 = vld [vmem:[%s2254_s30 + $0x26c] ss:$16 sps:$4 sm:$0xff]   ;;  %v1859_v21 = vld [vmem:[%s2254_s30 + $0x260] ss:$16 sps:$4 sm:$0xff]  }
  0x7f   : > { %1097 = vmatprep.subr.bf16.mxu0 %v1784_v33  ;;  %1183 = vmatprep.subr.bf16.mxu1 %v1786_v34  ;;  %v1862_v22 = vld [vmem:[%s2254_s30 + $0x268] ss:$16 sps:$4 sm:$0xff]   ;;  %v1867_v23 = vld [vmem:[%s2254_s30 + $0x284] ss:$16 sps:$4 sm:$0xff]   ;;  %v1870_v24 = vld [vmem:[%s2254_s30 + $0x28c] ss:$16 sps:$4 sm:$0xff]  }
  0x80   : > { %v1865_v25 = vld [vmem:[%s2254_s30 + $0x280] ss:$16 sps:$4 sm:$0xff]   ;;  %v1868_v26 = vld [vmem:[%s2254_s30 + $0x288] ss:$16 sps:$4 sm:$0xff]   ;;  %v1873_v27 = vld [vmem:[%s2254_s30 + $0x2a4] ss:$16 sps:$4 sm:$0xff]  }
  0x81   : > { %v1876_v28 = vld [vmem:[%s2254_s30 + $0x2ac] ss:$16 sps:$4 sm:$0xff]   ;;  %v1871_v29 = vld [vmem:[%s2254_s30 + $0x2a0] ss:$16 sps:$4 sm:$0xff]   ;;  %v1874_v30 = vld [vmem:[%s2254_s30 + $0x2a8] ss:$16 sps:$4 sm:$0xff]  }
  0x82   : > { %1098 = vmatpush1.bf16.msra.mxu0 %v1788_v35  ;;  %1184 = vmatpush1.bf16.msra.mxu1 %v1789_v36  ;;  %v1879_v31 = vld [vmem:[%s2254_s30 + $0x2c4] ss:$16 sps:$4 sm:$0xff]   ;;  %v1882_v32 = vld [vmem:[%s2254_s30 + $0x2cc] ss:$16 sps:$4 sm:$0xff]   ;;  %v1877_v34 = vld [vmem:[%s2254_s30 + $0x2c0] ss:$16 sps:$4 sm:$0xff]  }
  0x83   : > { %1099 = vmatprep.subr.bf16.mxu0 %v1790_v37  ;;  %1185 = vmatprep.subr.bf16.mxu1 %v1792_v38  ;;  %v1939_v33 = vld [vmem:[%s2252_s4 + $0xc] ss:$16 sps:$4 sm:$0xff]   ;;  %v1880_v35 = vld [vmem:[%s2254_s30 + $0x2c8] ss:$16 sps:$4 sm:$0xff]   ;;  %v1885_v36 = vld [vmem:[%s2254_s30 + $0x2e4] ss:$16 sps:$4 sm:$0xff]  }
  0x84   : > { %v1888_v37 = vld [vmem:[%s2254_s30 + $0x2ec] ss:$16 sps:$4 sm:$0xff]   ;;  %v1883_v38 = vld [vmem:[%s2254_s30 + $0x2e0] ss:$16 sps:$4 sm:$0xff]   ;;  %p1623_p12 = scmp.ne.s32.totalorder %s2050_s19, 48 }
  0x85   : > { %v1912_v53 = vld [vmem:[%s2254_s30 + $0x36c] ss:$16 sps:$4 sm:$0xff]  }
  0x86   : > { %1100 = vmatpush1.bf16.msra.mxu0 %v1794_v39  ;;  %1186 = vmatpush1.bf16.msra.mxu1 %v1795_v40  ;;  %v1886_v39 = vld [vmem:[%s2254_s30 + $0x2e8] ss:$16 sps:$4 sm:$0xff]   ;;  %v1891_v40 = vld [vmem:[%s2254_s30 + $0x304] ss:$16 sps:$4 sm:$0xff]  }
  0x87   : > { %1101 = vmatprep.subr.bf16.mxu0 %v1796_v41  ;;  %1187 = vmatprep.subr.bf16.mxu1 %v1798_v42  ;;  %v1894_v41 = vld [vmem:[%s2254_s30 + $0x30c] ss:$16 sps:$4 sm:$0xff]   ;;  %v1889_v42 = vld [vmem:[%s2254_s30 + $0x300] ss:$16 sps:$4 sm:$0xff]  }
  0x8a   : > { %1102 = vmatpush1.bf16.msra.mxu0 %v1800_v43  ;;  %1188 = vmatpush1.bf16.msra.mxu1 %v1801_v44  ;;  %v1892_v43 = vld [vmem:[%s2254_s30 + $0x308] ss:$16 sps:$4 sm:$0xff]   ;;  %v1897_v44 = vld [vmem:[%s2254_s30 + $0x324] ss:$16 sps:$4 sm:$0xff]  }
  0x8b   : > { %1103 = vmatprep.subr.bf16.mxu0 %v1802_v45  ;;  %1189 = vmatprep.subr.bf16.mxu1 %v1804_v46  ;;  %v1900_v45 = vld [vmem:[%s2254_s30 + $0x32c] ss:$16 sps:$4 sm:$0xff]   ;;  %v1895_v46 = vld [vmem:[%s2254_s30 + $0x320] ss:$16 sps:$4 sm:$0xff]  }
  0x8e   : > { %1104 = vmatpush1.bf16.msra.mxu0 %v1806_v47  ;;  %1190 = vmatpush1.bf16.msra.mxu1 %v1807_v48  ;;  %v1898_v47 = vld [vmem:[%s2254_s30 + $0x328] ss:$16 sps:$4 sm:$0xff]   ;;  %v1903_v48 = vld [vmem:[%s2254_s30 + $0x344] ss:$16 sps:$4 sm:$0xff]  }
  0x8f   : > { %1105 = vmatprep.subr.bf16.mxu0 %v1808_v49  ;;  %1191 = vmatprep.subr.bf16.mxu1 %v1810_v50  ;;  %v1906_v49 = vld [vmem:[%s2254_s30 + $0x34c] ss:$16 sps:$4 sm:$0xff]   ;;  %v1901_v50 = vld [vmem:[%s2254_s30 + $0x340] ss:$16 sps:$4 sm:$0xff]  }
  0x92   : > { %1106 = vmatpush1.bf16.msra.mxu0 %v1812_v51  ;;  %1192 = vmatpush1.bf16.msra.mxu1 %v1813_v52  ;;  %v1904_v51 = vld [vmem:[%s2254_s30 + $0x348] ss:$16 sps:$4 sm:$0xff]   ;;  %v1909_v52 = vld [vmem:[%s2254_s30 + $0x364] ss:$16 sps:$4 sm:$0xff]  }
  0x93   : > { %1107 = vmatprep.subr.bf16.mxu0 %v1814_v54  ;;  %1193 = vmatprep.subr.bf16.mxu1 %v1816_v55  ;;  %v1907_v54 = vld [vmem:[%s2254_s30 + $0x360] ss:$16 sps:$4 sm:$0xff]   ;;  %v1910_v55 = vld [vmem:[%s2254_s30 + $0x368] ss:$16 sps:$4 sm:$0xff]  }
  0x96   : > { %1108 = vmatpush1.bf16.msra.mxu0 %v1818_v56  ;;  %1194 = vmatpush1.bf16.msra.mxu1 %v1819_v57  ;;  %v1915_v56 = vld [vmem:[%s2254_s30 + $0x384] ss:$16 sps:$4 sm:$0xff]   ;;  %v1918_v57 = vld [vmem:[%s2254_s30 + $0x38c] ss:$16 sps:$4 sm:$0xff]  }
  0x97   : > { %1109 = vmatprep.subr.bf16.mxu0 %v1820_v58  ;;  %1195 = vmatprep.subr.bf16.mxu1 %v1822_v59  ;;  %v1913_v58 = vld [vmem:[%s2254_s30 + $0x380] ss:$16 sps:$4 sm:$0xff]   ;;  %v1916_v59 = vld [vmem:[%s2254_s30 + $0x388] ss:$16 sps:$4 sm:$0xff]  }
  0x9a   : > { %1110 = vmatpush1.bf16.msra.mxu0 %v1824_v60  ;;  %1196 = vmatpush1.bf16.msra.mxu1 %v1825_v61  ;;  %v1921_v60 = vld [vmem:[%s2254_s30 + $0x3a4] ss:$16 sps:$4 sm:$0xff]   ;;  %v1924_v61 = vld [vmem:[%s2254_s30 + $0x3ac] ss:$16 sps:$4 sm:$0xff]  }
  0x9b   : > { %1111 = vmatprep.subr.bf16.mxu0 %v1826_v62  ;;  %1197 = vmatprep.subr.bf16.mxu1 %v1828_v63  ;;  %v1919_v62 = vld [vmem:[%s2254_s30 + $0x3a0] ss:$16 sps:$4 sm:$0xff]   ;;  %v1922_v63 = vld [vmem:[%s2254_s30 + $0x3a8] ss:$16 sps:$4 sm:$0xff]  }
  0x9e   : > { %1112 = vmatpush1.bf16.msra.mxu0 %v1830_v0  ;;  %1198 = vmatpush1.bf16.msra.mxu1 %v1831_v1  ;;  %v1927_v0 = vld [vmem:[%s2254_s30 + $0x3c4] ss:$16 sps:$4 sm:$0xff]   ;;  %v1930_v1 = vld [vmem:[%s2254_s30 + $0x3cc] ss:$16 sps:$4 sm:$0xff]  }
  0x9f   : > { %1113 = vmatprep.subr.bf16.mxu0 %v1832_v2  ;;  %1199 = vmatprep.subr.bf16.mxu1 %v1834_v3  ;;  %v1925_v2 = vld [vmem:[%s2254_s30 + $0x3c0] ss:$16 sps:$4 sm:$0xff]   ;;  %v1928_v3 = vld [vmem:[%s2254_s30 + $0x3c8] ss:$16 sps:$4 sm:$0xff]  }
  0xa2   : > { %1114 = vmatpush1.bf16.msra.mxu0 %v1836_v4  ;;  %1200 = vmatpush1.bf16.msra.mxu1 %v1837_v5  ;;  %v1933_v4 = vld [vmem:[%s2254_s30 + $0x3e4] ss:$16 sps:$4 sm:$0xff]   ;;  %v1936_v5 = vld [vmem:[%s2254_s30 + $0x3ec] ss:$16 sps:$4 sm:$0xff]  }
  0xa3   : > { %1126 = vmatprep.subr.bf16.mxu0 %v1843_v6  ;;  %1212 = vmatprep.subr.bf16.mxu1 %v1846_v7  ;;  %v1931_v6 = vld [vmem:[%s2254_s30 + $0x3e0] ss:$16 sps:$4 sm:$0xff]   ;;  %v1934_v7 = vld [vmem:[%s2254_s30 + $0x3e8] ss:$16 sps:$4 sm:$0xff]  }
  0xa5   : > { %1116 = vmatmul.mubr.bf16.vlgmr.msra.gmra.mrb[0].mxu0 %v1838_v8  ;;  %1202 = vmatmul.mubr.bf16.vlgmr.msra.gmra.mrb[0].mxu1 %v1838_v8  ;;  %v1937_v8 = vld [vmem:[%s2252_s4 + $0x8] ss:$16 sps:$4 sm:$0xff]  }
  0xa6   : > { %1127 = vmatpush1.bf16.msra.mxu0 %v1841_v9  ;;  %1213 = vmatpush1.bf16.msra.mxu1 %v1844_v10  ;;  %v283_v9 = vld [vmem:[#allocation2] sm:$0xff]  ;;  %v285_v10 = vld [vmem:[#allocation2 + $0x10] sm:$0xff] }
  0xa7   : > { %1128 = vmatprep.subr.bf16.mxu0 %v1849_v11  ;;  %1214 = vmatprep.subr.bf16.mxu1 %v1852_v12  ;;  %v284_v11 = vld [vmem:[#allocation2 + $0x8] sm:$0xff]  ;;  %v286_v12 = vld [vmem:[#allocation2 + $0x18] sm:$0xff] }
  0xa8   : > { %1158 = vmatprep.mubr.bf16.mxu0 %v1939_v33  ;;  %1244 = vmatprep.mubr.bf16.mxu1 %v1939_v33  ;;  %v1285_v33 = vlaneseq (!%p1623_p12) }
  0xaa   : > { %1129 = vmatpush1.bf16.msra.mxu0 %v1847_v13  ;;  %1215 = vmatpush1.bf16.msra.mxu1 %v1850_v14 }
  0xab   : > { %1130 = vmatprep.subr.bf16.mxu0 %v1855_v15  ;;  %1216 = vmatprep.subr.bf16.mxu1 %v1858_v16  ;;  %v287_v15 = vld [vmem:[#allocation2 + $0x20] sm:$0xff]  ;;  %v289_v16 = vld [vmem:[#allocation2 + $0x30] sm:$0xff] }
  0xae   : > { %1131 = vmatpush1.bf16.msra.mxu0 %v1853_v17  ;;  %1217 = vmatpush1.bf16.msra.mxu1 %v1856_v18 }
  0xaf   : > { %1132 = vmatprep.subr.bf16.mxu0 %v1861_v19  ;;  %1218 = vmatprep.subr.bf16.mxu1 %v1864_v20 }
  0xb2   : > { %1133 = vmatpush1.bf16.msra.mxu0 %v1859_v21  ;;  %1219 = vmatpush1.bf16.msra.mxu1 %v1862_v22  ;;  %v288_v21 = vld [vmem:[#allocation2 + $0x28] sm:$0xff]  ;;  %v290_v22 = vld [vmem:[#allocation2 + $0x38] sm:$0xff] }
  0xb3   : > { %1134 = vmatprep.subr.bf16.mxu0 %v1867_v23  ;;  %1220 = vmatprep.subr.bf16.mxu1 %v1870_v24 }
  0xb6   : > { %1135 = vmatpush1.bf16.msra.mxu0 %v1865_v25  ;;  %1221 = vmatpush1.bf16.msra.mxu1 %v1868_v26 }
  0xb7   : > { %1136 = vmatprep.subr.bf16.mxu0 %v1873_v27  ;;  %1222 = vmatprep.subr.bf16.mxu1 %v1876_v28 }
  0xba   : > { %1137 = vmatpush1.bf16.msra.mxu0 %v1871_v29  ;;  %1223 = vmatpush1.bf16.msra.mxu1 %v1874_v30 }
  0xbb   : > { %1138 = vmatprep.subr.bf16.mxu0 %v1879_v31  ;;  %1224 = vmatprep.subr.bf16.mxu1 %v1882_v32 }
  0xbe   : > { %1139 = vmatpush1.bf16.msra.mxu0 %v1877_v34  ;;  %1225 = vmatpush1.bf16.msra.mxu1 %v1880_v35  ;;  %v1286_v34 = vshrl.u32 (!%p1623_p12), %v1285_v33, 7  ;;  %v1283_v35 = vld [vmem:[%s268_s22] sm:$0xf] (!%p1623_p12) }
  0xbf   : > { %1140 = vmatprep.subr.bf16.mxu0 %v1885_v36  ;;  %1226 = vmatprep.subr.bf16.mxu1 %v1888_v37 }
  0xc0   : > { %v1287_v37 = vsub.s32 (!%p1623_p12), 0, %v1286_v34 }
  0xc2   : > { %1141 = vmatpush1.bf16.msra.mxu0 %v1883_v38  ;;  %1227 = vmatpush1.bf16.msra.mxu1 %v1886_v39  ;;  %v1291_v39 = vsub.s32 (!%p1623_p12), 1, %v1286_v34 }
  0xc3   : > { %1142 = vmatprep.subr.bf16.mxu0 %v1891_v40  ;;  %1228 = vmatprep.subr.bf16.mxu1 %v1894_v41  ;;  %v1295_v40 = vsub.s32 (!%p1623_p12), 2, %v1286_v34  ;;  %v1299_v41 = vsub.s32 (!%p1623_p12), 3, %v1286_v34 }
  0xc6   : > { %1143 = vmatpush1.bf16.msra.mxu0 %v1889_v42  ;;  %1229 = vmatpush1.bf16.msra.mxu1 %v1892_v43 }
  0xc7   : > { %1144 = vmatprep.subr.bf16.mxu0 %v1897_v44  ;;  %1230 = vmatprep.subr.bf16.mxu1 %v1900_v45  ;;  %v1288_v45 = vrot.slane (!%p1623_p12), %v1283_v35, %v1287_v37 }
  0xca   : > { %1145 = vmatpush1.bf16.msra.mxu0 %v1895_v46  ;;  %1231 = vmatpush1.bf16.msra.mxu1 %v1898_v47  ;;  %v1292_v46 = vrot.slane (!%p1623_p12), %v1283_v35, %v1291_v39  ;;  %v1296_v47 = vrot.slane (!%p1623_p12), %v1283_v35, %v1295_v40 }
  0xcb   : > { %1146 = vmatprep.subr.bf16.mxu0 %v1903_v48  ;;  %1232 = vmatprep.subr.bf16.mxu1 %v1906_v49  ;;  %v1300_v48 = vrot.slane (!%p1623_p12), %v1283_v35, %v1299_v41 }
  0xce   : > { %1147 = vmatpush1.bf16.msra.mxu0 %v1901_v50  ;;  %1233 = vmatpush1.bf16.msra.mxu1 %v1904_v51 }
  0xcf   : > { %1148 = vmatprep.subr.bf16.mxu0 %v1909_v52  ;;  %1234 = vmatprep.subr.bf16.mxu1 %v1912_v53 }
  0xd2   : > { %1149 = vmatpush1.bf16.msra.mxu0 %v1907_v54  ;;  %1235 = vmatpush1.bf16.msra.mxu1 %v1910_v55 }
  0xd3   : > { %1150 = vmatprep.subr.bf16.mxu0 %v1915_v56  ;;  %1236 = vmatprep.subr.bf16.mxu1 %v1918_v57 }
  0xd6   : > { %1151 = vmatpush1.bf16.msra.mxu0 %v1913_v58  ;;  %1237 = vmatpush1.bf16.msra.mxu1 %v1916_v59 }
  0xd7   : > { %1152 = vmatprep.subr.bf16.mxu0 %v1921_v60  ;;  %1238 = vmatprep.subr.bf16.mxu1 %v1924_v61 }
  0xda   : > { %1153 = vmatpush1.bf16.msra.mxu0 %v1919_v62  ;;  %1239 = vmatpush1.bf16.msra.mxu1 %v1922_v63 }
  0xdb   : > { %1154 = vmatprep.subr.bf16.mxu0 %v1927_v0  ;;  %1240 = vmatprep.subr.bf16.mxu1 %v1930_v1 }
  0xde   : > { %1155 = vmatpush1.bf16.msra.mxu0 %v1925_v2  ;;  %1241 = vmatpush1.bf16.msra.mxu1 %v1928_v3 }
  0xdf   : > { %1156 = vmatprep.subr.bf16.mxu0 %v1933_v4  ;;  %1242 = vmatprep.subr.bf16.mxu1 %v1936_v5 }
  0xe2   : > { %1157 = vmatpush1.bf16.msra.mxu0 %v1931_v6  ;;  %1243 = vmatpush1.bf16.msra.mxu1 %v1934_v7 }
  0xe5   : > { %1159 = vmatmul.mubr.bf16.vlgmr.msra.gmra.mrb[0].mxu0 %v1937_v8  ;;  %1245 = vmatmul.mubr.bf16.vlgmr.msra.gmra.mrb[0].mxu1 %v1937_v8 }
 0x1b8   : > { %v1160_v13 = vpop.f32.mrb[0].mxu0  ;;  %v1246_v14 = vpop.f32.mrb[0].mxu1  ;;  %1274 = sbr.rel (%p1623_p12) target bundleno = 459 (0x1cb), region = 67 }
 0x1b9   : > { %v1255_v17 = vadd.f32 %v1160_v13, %v283_v9  ;;  %v1257_v18 = vadd.f32 %v1246_v14, %v285_v10  ;;  %v1162_v19 = vpop.f32.mrb[1].mxu0  ;;  %v1248_v20 = vpop.f32.mrb[1].mxu1 }
 0x1ba   : > { %v1256_v23 = vadd.f32 %v1162_v19, %v284_v11  ;;  %v1258_v24 = vadd.f32 %v1248_v20, %v286_v12  ;;  %v1164_v25 = vpop.f32.mrb[2].mxu0  ;;  %v1250_v26 = vpop.f32.mrb[2].mxu1 }
 0x1bb   : > { %1263 = vst [vmem:[#allocation2] sm:$0xff] %v1255_v17  ;;  %1265 = vst [vmem:[#allocation2 + $0x10] sm:$0xff] %v1257_v18  ;;  %v1259_v27 = vadd.f32 %v1164_v25, %v287_v15  ;;  %v1261_v28 = vadd.f32 %v1250_v26, %v289_v16  ;;  %v1166_v29 = vpop.f32.mrb[3].mxu0  ;;  %v1252_v30 = vpop.f32.mrb[3].mxu1 }
 0x1bc   : > { %1264 = vst [vmem:[#allocation2 + $0x8] sm:$0xff] %v1256_v23  ;;  %1266 = vst [vmem:[#allocation2 + $0x18] sm:$0xff] %v1258_v24  ;;  %v1260_v31 = vadd.f32 %v1166_v29, %v288_v21  ;;  %v1262_v32 = vadd.f32 %v1252_v30, %v290_v22 }
 0x1bd   : > { %1267 = vst [vmem:[#allocation2 + $0x20] sm:$0xff] %v1259_v27  ;;  %1269 = vst [vmem:[#allocation2 + $0x30] sm:$0xff] %v1261_v28 }
 0x1be   : > { %1268 = vst [vmem:[#allocation2 + $0x28] sm:$0xff] %v1260_v31  ;;  %1270 = vst [vmem:[#allocation2 + $0x38] sm:$0xff] %v1262_v32 }
 0x1c2   : > { %v1275_v36 = vld [vmem:[#allocation2] sm:$0xff]  ;;  %v1277_v42 = vld [vmem:[#allocation2 + $0x10] sm:$0xff] }
 0x1c3   : > { %v1276_v38 = vld [vmem:[#allocation2 + $0x8] sm:$0xff]  ;;  %v1278_v43 = vld [vmem:[#allocation2 + $0x18] sm:$0xff]  ;;  %v1305_v52 = vadd.f32 %v1288_v45, %v1275_v36  ;;  %v1307_v54 = vadd.f32 %v1296_v47, %v1277_v42 }
 0x1c4   : > { %v1279_v44 = vld [vmem:[#allocation2 + $0x20] sm:$0xff]  ;;  %v1281_v50 = vld [vmem:[#allocation2 + $0x30] sm:$0xff]  ;;  %v1306_v53 = vadd.f32 %v1292_v46, %v1276_v38  ;;  %v1308_v55 = vadd.f32 %v1300_v48, %v1278_v43 }
 0x1c5   : > { %v1280_v49 = vld [vmem:[#allocation2 + $0x28] sm:$0xff]  ;;  %v1282_v51 = vld [vmem:[#allocation2 + $0x38] sm:$0xff]  ;;  %v1309_v56 = vadd.f32 %v1288_v45, %v1279_v44  ;;  %v1311_v58 = vadd.f32 %v1296_v47, %v1281_v50  ;;  %v1313_v60 = vmax.f32 %v1305_v52, 0.0  ;;  %v1315_v62 = vmax.f32 %v1307_v54, 0.0 }
 0x1c6   : > { %v1310_v57 = vadd.f32 %v1292_v46, %v1280_v49  ;;  %v1312_v59 = vadd.f32 %v1300_v48, %v1282_v51  ;;  %v1314_v61 = vmax.f32 %v1306_v53, 0.0  ;;  %v1316_v63 = vmax.f32 %v1308_v55, 0.0 }
 0x1c7   : > { %v1317_v0 = vmax.f32 %v1309_v56, 0.0  ;;  %v1319_v2 = vmax.f32 %v1311_v58, 0.0  ;;  %1321 = vst [vmem:[%s2268_s25] sm:$0xff] %v1313_v60  ;;  %1323 = vst [vmem:[%s2268_s25 + $0x10] sm:$0xff] %v1315_v62 }
 0x1c8   : > { %v1318_v1 = vmax.f32 %v1310_v57, 0.0  ;;  %v1320_v3 = vmax.f32 %v1312_v59, 0.0  ;;  %1322 = vst [vmem:[%s2268_s25 + $0x8] sm:$0xff] %v1314_v61  ;;  %1324 = vst [vmem:[%s2268_s25 + $0x18] sm:$0xff] %v1316_v63 }
 0x1c9   : > { %1325 = vst [vmem:[%s2268_s25 + $0x20] sm:$0xff] %v1317_v0  ;;  %1327 = vst [vmem:[%s2268_s25 + $0x30] sm:$0xff] %v1319_v2 }
 0x1ca   : > { %1326 = vst [vmem:[%s2268_s25 + $0x28] sm:$0xff] %v1318_v1  ;;  %1328 = vst [vmem:[%s2268_s25 + $0x38] sm:$0xff] %v1320_v3 }
 0x1cb PF: > { %p2484_p11 = scmp.ne.s32.totalorder %s2482_s14, 0 }
 0x1cc   : > { %s1631_s19 = sshll.u32 (%p2484_p11), %s2054_s20, 5 }
 0x1cd   : > { %1335 = sbr.rel (!%p2484_p11) target bundleno = 468 (0x1d4), region = 71  ;;  %s1338_s5 = scalar_lea.vmem (%p2484_p11), %s2470_s3, %s1631_s19 }
 0x1ce   : > { %v1351_v4 = vld [vmem:[%s2268_s25] sm:$0xff] (%p2484_p11)  ;;  %v1355_v6 = vld [vmem:[%s2268_s25 + $0x10] sm:$0xff] (%p2484_p11) }
 0x1cf   : > { %v1353_v5 = vld [vmem:[%s2268_s25 + $0x8] sm:$0xff] (%p2484_p11)  ;;  %v1357_v7 = vld [vmem:[%s2268_s25 + $0x18] sm:$0xff] (%p2484_p11)  ;;  %1352 = vst [vmem:[%s1338_s5] sm:$0xff] (%p2484_p11), %v1351_v4  ;;  %1356 = vst [vmem:[%s1338_s5 + $0x10] sm:$0xff] (%p2484_p11), %v1355_v6 }
 0x1d0   : > { %v1359_v8 = vld [vmem:[%s2268_s25 + $0x20] sm:$0xff] (%p2484_p11)  ;;  %1354 = vst [vmem:[%s1338_s5 + $0x8] sm:$0xff] (%p2484_p11), %v1353_v5  ;;  %1358 = vst [vmem:[%s1338_s5 + $0x18] sm:$0xff] (%p2484_p11), %v1357_v7  ;;  %v1363_v10 = vld [vmem:[%s2268_s25 + $0x30] sm:$0xff] (%p2484_p11) }
 0x1d1   : > { %v1361_v9 = vld [vmem:[%s2268_s25 + $0x28] sm:$0xff] (%p2484_p11)  ;;  %1360 = vst [vmem:[%s1338_s5 + $0x100] sm:$0xff] (%p2484_p11), %v1359_v8  ;;  %v1365_v11 = vld [vmem:[%s2268_s25 + $0x38] sm:$0xff] (%p2484_p11)  ;;  %1364 = vst [vmem:[%s1338_s5 + $0x110] sm:$0xff] (%p2484_p11), %v1363_v10 }
 0x1d2   : > { %1362 = vst [vmem:[%s1338_s5 + $0x108] sm:$0xff] (%p2484_p11), %v1361_v9  ;;  %1366 = vst [vmem:[%s1338_s5 + $0x118] sm:$0xff] (%p2484_p11), %v1365_v11 }
 0x1d4 PF: > { %s16_s23 = sadd.s32 1, %s2066_s23   ;;  %s2485_s20 = sld [smem:[#allocation11_spill]] }
 0x1d5   : > { %p13_p13 = scmp.ge.s32.totalorder %s16_s23, 394   ;;  %s2486_s28 = sld [smem:[#allocation8_spill]] }
 0x1d6   : > { %s2487_s0 = sld [smem:[#allocation9_spill]]  ;;  %s2488_s22 = sld [smem:[#allocation10_spill]] }
 0x1d7   : > { %s2489_s12 = smov %s2026_s13  ;;  %s2490_s13 = smov %s2196_s11 }
 0x1d8   : > { %s2491_s14 = smov %s2034_s15  ;;  %s2492_s15 = smov %s2038_s16 }
 0x1d9   : > { %s2493_s16 = smov %s2188_s8  ;;  %s2494_s17 = smov %s2046_s18 }
 0x1da   : > { %s2495_s18 = smov %s2485_s20  ;;  %s2496_s19 = smov %s2058_s21 }
 0x1db   : > { %s2497_s20 = smov %s2486_s28  ;;  %15 = sbr.rel (!%p13_p13) target bundleno = 9 (0x9), region = 137 }
 0x1dc   : > { %s2498_s21 = smov %s2487_s0 }
 0x1e2   :  { %1382 = vsyncpa [#allocation5], 1 }
 0x1e3   :  { %1384 = vsyncpa [#allocation5 + $0x1], 1 }

// kernel: _head_forward.5
= control target key start
LH: loop header
LB: loop body
LE: loop exit
PB: predicated region body
PF: predicated region fallthrough
CT: control target
= control target key end

     0   :  { %s977_s12 = smov 0   ;;  %s979_s13 = smov 0   ;;  %s1093_s0 = inlined_call_operand.vmem [shape: bf16[16,4096], index: 0, kind: input, shape index: {}]   ;;  %s1094_s1 = inlined_call_operand.vmem [shape: bf16[4096,128], index: 1, kind: input, shape index: {}]   ;;  %s1095_s2 = inlined_call_operand.vmem [shape: f32[1,128], index: 2, kind: input, shape index: {}]   ;;  %s1096_s3 = inlined_call_operand.vmem [shape: f32[16,128], index: 3, kind: output, shape index: {}]  }
   0x1   :  { %s981_s14 = smov 0   ;;  %s983_s15 = smov 0  }
   0x2   :  { %s985_s16 = smov 0  }
   0x3 LB: > { %s22_s17 = sadd.s32 1, %s950_s15  ;;  %p39_p1 = scmp.ne.s32.totalorder %s942_s13, %s938_s12  ;;  %s954_s16 = sphi %s985_s16, %s13_s16   ;;  %s950_s15 = sphi %s983_s15, %s1100_s15   ;;  %s946_s14 = sphi %s981_s14, %s1099_s14   ;;  %s942_s13 = sphi %s979_s13, %s1098_s13   ;;  %s938_s12 = sphi %s977_s12, %s1097_s12  }
   0x4   : > { %p23_p0 = scmp.ge.s32.totalorder %s22_s17, 8  ;;  %p40_p2 = scmp.eq.s32.totalorder %s954_s16, 0 }
   0x5   : > { %s32_s19 = sadd.s32 1, %s942_s13  ;;  %p742_p5 = scmp.ge.s32.totalorder %s954_s16, 8 }
   0x6   : > { %s1102_s17 = smov (%p23_p0, %s22_s17), 0  ;;  %p41_p3 = por %p40_p2, %p39_p1 }
   0x7   : > { %s29_s18 = ssub.s32 %s950_s15, %s1102_s17  ;;  %151 = sbr.rel (%p742_p5) target bundleno = 21 (0x15), region = 20 }
   0x8   : > { %p30_p4 = scmp.eq.s32.totalorder %s29_s18, 0 }
   0xa   : > { %s1012_s20 = scalar_select %p30_p4, %s942_s13, %s32_s19  }
   0xe   : > { %154 = sbr.rel (!%p41_p3) target bundleno = 21 (0x15), region = 24  ;;  %s156_s21 = sand.u32 (%p41_p3), 1, %s942_s13  }
   0xf   : > { %s792_s22 = sshll.u32 (%p41_p3), %s950_s15, 4  ;;  %s743_s23 = sshll.u32 (%p41_p3), %s156_s21, 5 }
  0x10   : > { %s161_s26 = scalar_lea.vmem (%p41_p3), %s1093_s0, %s792_s22  ;;  %s158_s27 = scalar_lea.vmem (%p41_p3), [#allocation3], %s743_s23 }
  0x11   : > { %v174_v0 = vld [vmem:[%s161_s26] sm:$0xff] (%p41_p3)  ;;  %v176_v1 = vld [vmem:[%s161_s26 + $0x8] sm:$0xff] (%p41_p3) }
  0x12   : > { %v178_v2 = vld [vmem:[%s161_s26 + $0x80] sm:$0xff] (%p41_p3)  ;;  %175 = vst [vmem:[%s158_s27] sm:$0xff] (%p41_p3), %v174_v0  ;;  %177 = vst [vmem:[%s158_s27 + $0x8] sm:$0xff] (%p41_p3), %v176_v1  ;;  %v180_v3 = vld [vmem:[%s161_s26 + $0x88] sm:$0xff] (%p41_p3) }
  0x13   : > { %179 = vst [vmem:[%s158_s27 + $0x10] sm:$0xff] (%p41_p3), %v178_v2  ;;  %181 = vst [vmem:[%s158_s27 + $0x18] sm:$0xff] (%p41_p3), %v180_v3 }
  0x15 PF: > { %p746_p6 = scmp.ge.s32.totalorder %s954_s16, 1  ;;  %p198_p7 = scmp.lt.s32.totalorder %s954_s16, 9 }
  0x17   : > { %p199_p8 = pnand %p746_p6, %p198_p7 }
  0x18   : > { %s205_s28 = sand.u32 (!%p199_p8), 1, %s938_s12   ;;  %s748_s29 = sshll.u32 (!%p199_p8), %s946_s14, 6 }
  0x19   : > { %202 = sbr.rel (%p199_p8) target bundleno = 306 (0x132), region = 51  ;;  %s747_s30 = sshll.u32 (!%p199_p8), %s205_s28, 5 }
  0x1a   : > { %p240_p9 = scmp.lt.s32.totalorder (!%p199_p8), %s748_s29, 511  ;;  %s1029_s8 = scalar_lea.vmem (!%p199_p8), [#allocation3], %s747_s30 }
  0x1b   : > { %p750_p10 = scmp.ne.s32.totalorder (!%p199_p8), %s946_s14, 0 }
  0x20   : > { %s1104_s29 = smov (!%p240_p9, %s748_s29), 511  ;;  %259 = sbr.rel (%p750_p10) target bundleno = 39 (0x27), region = 59 }
  0x21   : > { %s749_s4 = sshll.u32 %s1104_s29, 2  ;;  %v956_v4 = vmov (!%p750_p10), 0.0  }
  0x22   : > { %s1027_s7 = scalar_lea.vmem %s1094_s1, %s749_s4  ;;  %260 = vst [vmem:[#allocation2] sm:$0xff] (!%p750_p10), %v956_v4  ;;  %261 = vst [vmem:[#allocation2 + $0x8] sm:$0xff] (!%p750_p10), %v956_v4 }
  0x27 PF: > { %v878_v5 = vld [vmem:[%s1027_s7 + $0x40] sm:$0xff]   ;;  %v882_v9 = vld [vmem:[%s1027_s7 + $0x48] sm:$0xff]   ;;  %v886_v13 = vld [vmem:[%s1027_s7 + $0x50] sm:$0xff]   ;;  %p787_p11 = scmp.ne.s32.totalorder %s946_s14, 7 }
  0x28   : > { %v879_v6 = vld [vmem:[%s1027_s7 + $0xc0] sm:$0xff]   ;;  %793 = vmatprep.subr.bf16.mxu0 %v878_v5  ;;  %v883_v10 = vld [vmem:[%s1027_s7 + $0xc8] sm:$0xff]   ;;  %v887_v14 = vld [vmem:[%s1027_s7 + $0xd0] sm:$0xff]  }
  0x29   : > { %v880_v7 = vld [vmem:[%s1027_s7] sm:$0xff]   ;;  %815 = vmatprep.subr.bf16.mxu1 %v879_v6  ;;  %v884_v11 = vld [vmem:[%s1027_s7 + $0x8] sm:$0xff]   ;;  %v888_v15 = vld [vmem:[%s1027_s7 + $0x10] sm:$0xff]  }
  0x2a   : > { %v881_v8 = vld [vmem:[%s1027_s7 + $0x80] sm:$0xff]   ;;  %794 = vmatpush3.bf16.msra.mxu0 %v880_v7  ;;  %v885_v12 = vld [vmem:[%s1027_s7 + $0x88] sm:$0xff]   ;;  %v889_v16 = vld [vmem:[%s1027_s7 + $0x90] sm:$0xff]  }
  0x2b   : > { %816 = vmatpush3.bf16.msra.mxu1 %v881_v8  ;;  %795 = vmatprep.subr.bf16.mxu0 %v882_v9  ;;  %v890_v17 = vld [vmem:[%s1027_s7 + $0x58] sm:$0xff]   ;;  %v894_v21 = vld [vmem:[%s1027_s7 + $0x60] sm:$0xff]   ;;  %v898_v25 = vld [vmem:[%s1027_s7 + $0x68] sm:$0xff]  }
  0x2c   : > { %817 = vmatprep.subr.bf16.mxu1 %v883_v10  ;;  %v891_v18 = vld [vmem:[%s1027_s7 + $0xd8] sm:$0xff]   ;;  %v895_v22 = vld [vmem:[%s1027_s7 + $0xe0] sm:$0xff]   ;;  %v899_v26 = vld [vmem:[%s1027_s7 + $0xe8] sm:$0xff]  }
  0x2d   : > { %v892_v19 = vld [vmem:[%s1027_s7 + $0x18] sm:$0xff]   ;;  %v896_v23 = vld [vmem:[%s1027_s7 + $0x20] sm:$0xff]   ;;  %v900_v27 = vld [vmem:[%s1027_s7 + $0x28] sm:$0xff]  }
  0x2e   : > { %796 = vmatpush3.bf16.msra.mxu0 %v884_v11  ;;  %v893_v20 = vld [vmem:[%s1027_s7 + $0x98] sm:$0xff]   ;;  %v897_v24 = vld [vmem:[%s1027_s7 + $0xa0] sm:$0xff]   ;;  %v901_v28 = vld [vmem:[%s1027_s7 + $0xa8] sm:$0xff]  }
  0x2f   : > { %818 = vmatpush3.bf16.msra.mxu1 %v885_v12  ;;  %797 = vmatprep.subr.bf16.mxu0 %v886_v13  ;;  %v902_v29 = vld [vmem:[%s1027_s7 + $0x70] sm:$0xff]   ;;  %v906_v33 = vld [vmem:[%s1027_s7 + $0x78] sm:$0xff]   ;;  %v262_v50 = vld [vmem:[#allocation2] sm:$0xff] }
  0x30   : > { %819 = vmatprep.subr.bf16.mxu1 %v887_v14  ;;  %v903_v30 = vld [vmem:[%s1027_s7 + $0xf0] sm:$0xff]   ;;  %v907_v34 = vld [vmem:[%s1027_s7 + $0xf8] sm:$0xff]   ;;  %v263_v55 = vld [vmem:[#allocation2 + $0x8] sm:$0xff] }
  0x31   : > { %v904_v31 = vld [vmem:[%s1027_s7 + $0x30] sm:$0xff]   ;;  %v908_v35 = vld [vmem:[%s1027_s7 + $0x38] sm:$0xff]   ;;  %v788_v60 = vld [vmem:[%s1095_s2] ss:$0 sm:$0xff] (!%p787_p11) }
  0x32   : > { %798 = vmatpush3.bf16.msra.mxu0 %v888_v15  ;;  %v905_v32 = vld [vmem:[%s1027_s7 + $0xb0] sm:$0xff]   ;;  %v909_v36 = vld [vmem:[%s1027_s7 + $0xb8] sm:$0xff]  }
  0x33   : > { %820 = vmatpush3.bf16.msra.mxu1 %v889_v16  ;;  %799 = vmatprep.subr.bf16.mxu0 %v890_v17  ;;  %v910_v37 = vld [vmem:[%s1029_s8] ss:$16 sps:$4 sm:$0xff]   ;;  %v912_v38 = vld [vmem:[%s1029_s8 + $0x4] ss:$16 sps:$4 sm:$0xff]   ;;  %v913_v39 = vld [vmem:[%s1029_s8 + $0x8] ss:$16 sps:$4 sm:$0xff]  }
  0x34   : > { %821 = vmatprep.subr.bf16.mxu1 %v891_v18  ;;  %v915_v40 = vld [vmem:[%s1029_s8 + $0xc] ss:$16 sps:$4 sm:$0xff]   ;;  %576 = vmatprep.mubr.bf16.mxu0 %v912_v38 }
  0x35   : > { %617 = vmatprep.mubr.bf16.mxu1 %v915_v40 }
  0x36   : > { %800 = vmatpush3.bf16.msra.mxu0 %v892_v19 }
  0x37   : > { %822 = vmatpush3.bf16.msra.mxu1 %v893_v20  ;;  %801 = vmatprep.subr.bf16.mxu0 %v894_v21 }
  0x38   : > { %823 = vmatprep.subr.bf16.mxu1 %v895_v22 }
  0x3a   : > { %802 = vmatpush3.bf16.msra.mxu0 %v896_v23 }
  0x3b   : > { %824 = vmatpush3.bf16.msra.mxu1 %v897_v24  ;;  %803 = vmatprep.subr.bf16.mxu0 %v898_v25 }
  0x3c   : > { %825 = vmatprep.subr.bf16.mxu1 %v899_v26 }
  0x3e   : > { %804 = vmatpush3.bf16.msra.mxu0 %v900_v27 }
  0x3f   : > { %826 = vmatpush3.bf16.msra.mxu1 %v901_v28  ;;  %805 = vmatprep.subr.bf16.mxu0 %v902_v29 }
  0x40   : > { %827 = vmatprep.subr.bf16.mxu1 %v903_v30 }
  0x42   : > { %806 = vmatpush3.bf16.msra.mxu0 %v904_v31 }
  0x43   : > { %828 = vmatpush3.bf16.msra.mxu1 %v905_v32  ;;  %807 = vmatprep.subr.bf16.mxu0 %v906_v33 }
  0x44   : > { %829 = vmatprep.subr.bf16.mxu1 %v907_v34 }
  0x46   : > { %808 = vmatpush3.bf16.msra.mxu0 %v908_v35 }
  0x47   : > { %830 = vmatpush3.bf16.msra.mxu1 %v909_v36 }
  0x49   : > { %577 = vmatmul.mubr.bf16.vlgmr.msra.gmra.mrb[0].mxu0 %v910_v37 }
  0x4a   : > { %618 = vmatmul.mubr.bf16.vlgmr.msra.gmra.mrb[0].mxu1 %v913_v39 }
 0x11c   : > { %v809_v41 = vpop.f32.mrb[0].mxu0 }
 0x11d   : > { %v831_v42 = vpop.f32.mrb[0].mxu1  ;;  %v810_v43 = vpop.f32.mrb[1].mxu0 }
 0x11e   : > { %v811_v44 = vadd.f32 %v810_v43, %v809_v41  ;;  %v832_v45 = vpop.f32.mrb[1].mxu1  ;;  %v812_v46 = vpop.f32.mrb[2].mxu0 }
 0x11f   : > { %v833_v47 = vadd.f32 %v832_v45, %v831_v42  ;;  %v834_v48 = vpop.f32.mrb[2].mxu1  ;;  %v813_v49 = vpop.f32.mrb[3].mxu0 }
 0x120   : > { %v814_v51 = vadd.f32 %v813_v49, %v812_v46  ;;  %v835_v52 = vpop.f32.mrb[3].mxu1 }
 0x121   : > { %v620_v53 = vadd.f32 %v833_v47, %v811_v44  ;;  %v836_v54 = vadd.f32 %v835_v52, %v834_v48  ;;  %633 = sbr.rel (%p787_p11) target bundleno = 306 (0x132), region = 63 }
 0x123   : > { %v626_v56 = vadd.f32 %v620_v53, %v262_v50  ;;  %v623_v57 = vadd.f32 %v836_v54, %v814_v51 }
 0x125   : > { %628 = vst [vmem:[#allocation2] sm:$0xff] %v626_v56  ;;  %v627_v58 = vadd.f32 %v623_v57, %v263_v55 }
 0x127   : > { %629 = vst [vmem:[#allocation2 + $0x8] sm:$0xff] %v627_v58 }
 0x12c   : > { %v634_v59 = vld [vmem:[#allocation2] sm:$0xff] }
 0x12d   : > { %v643_v62 = vadd.f32 %v788_v60, %v634_v59 }
 0x12e   : > { %v635_v61 = vld [vmem:[#allocation2 + $0x8] sm:$0xff] }
 0x12f   : > { %v644_v63 = vadd.f32 %v788_v60, %v635_v61  ;;  %645 = vst [vmem:[%s1096_s3] sm:$0xff] %v643_v62 }
 0x131   : > { %646 = vst [vmem:[%s1096_s3 + $0x8] sm:$0xff] %v644_v63 }
 0x132 PF: > { %s13_s16 = sadd.s32 1, %s954_s16   ;;  %s1097_s12 = smov %s942_s13 }
 0x133   : > { %p10_p12 = scmp.ge.s32.totalorder %s13_s16, 10   ;;  %s1098_s13 = smov %s1012_s20 }
 0x134   : > { %s1099_s14 = smov %s950_s15  ;;  %s1100_s15 = smov %s1102_s17 }
 0x135   :  { %12 = sbr.rel (!%p10_p12) target bundleno = 3 (0x3), region = 104 }

// kernel: _head_forward.4
= control target key start
LH: loop header
LB: loop body
LE: loop exit
PB: predicated region body
PF: predicated region fallthrough
CT: control target
= control target key end

     0   :  { %s2467_s0 = inlined_call_operand.vmem [shape: bf16[16,4096], index: 0, kind: input, shape index: {}]   ;;  %s2468_s1 = inlined_call_operand.hbm [shape: bf16[4096,4096], index: 1, kind: input, shape index: {}]   ;;  %s2469_s2 = inlined_call_operand.vmem [shape: f32[1,4096], index: 2, kind: input, shape index: {}]   ;;  %s2470_s3 = inlined_call_operand.vmem [shape: f32[16,4096], index: 3, kind: output, shape index: {}]  }
   0x1   :  { %2474 = sst [smem:[#allocation12_spill]] %s2467_s0 }
   0x2   :  { %8 = vsyncpa [#allocation5], 0 }
   0x3   :  { %10 = vsyncpa [#allocation5 + $0x1], 0  ;;  %s2093_s12 = smov 0   ;;  %s2095_s13 = smov 0  }
   0x4   :  { %s2097_s14 = smov 0   ;;  %s2099_s15 = smov 0  }
   0x5   :  { %s2101_s16 = smov 0   ;;  %s2103_s17 = smov 0  }
   0x6   :  { %s2105_s18 = smov 0   ;;  %s2107_s19 = smov 0  }
   0x7   :  { %s2109_s20 = smov 0   ;;  %s2111_s21 = smov 0  }
   0x8   :  { %s2113_s22 = smov 0   ;;  %s2115_s23 = smov 0  }
   0x9 LB: > { %2475 = sst [smem:[#allocation8_spill]] %s2062_s22  ;;  %s1473_s24 = sadd.s32 4294967295, %s2066_s23   ;;  %s2066_s23 = sphi %s2115_s23, %s16_s23   ;;  %s2062_s22 = sphi %s2113_s22, %s2488_s22   ;;  %s2058_s21 = sphi %s2111_s21, %s2498_s21   ;;  %s2054_s20 = sphi %s2109_s20, %s2497_s20   ;;  %s2050_s19 = sphi %s2107_s19, %s2496_s19   ;;  %s2046_s18 = sphi %s2105_s18, %s2495_s18   ;;  %s2042_s17 = sphi %s2103_s17, %s2494_s17   ;;  %s2038_s16 = sphi %s2101_s16, %s2493_s16   ;;  %s2034_s15 = sphi %s2099_s15, %s2492_s15   ;;  %s2030_s14 = sphi %s2097_s14, %s2491_s14   ;;  %s2026_s13 = sphi %s2095_s13, %s2490_s13   ;;  %s2022_s12 = sphi %s2093_s12, %s2489_s12  }
   0xa   : > { %s25_s25 = sadd.s32 1, %s2058_s21  ;;  %s28_s26 = sadd.s32 1, %s2062_s22 }
   0xb   : > { %p26_p0 = scmp.ge.s32.totalorder %s25_s25, 8  ;;  %s35_s27 = sadd.s32 1, %s2046_s18 }
   0xc   : > { %p42_p1 = scmp.ne.s32.totalorder %s2046_s18, %s2042_s17  ;;  %p43_p2 = scmp.eq.s32.totalorder %s2066_s23, 0 }
   0xd   : > { %s2500_s25 = smov (%p26_p0, %s25_s25), 0  ;;  %s2502_s26 = smov (!%p26_p0, %s28_s26), %s2062_s22 }
   0xe   : > { %2476 = sst [smem:[#allocation9_spill]] %s2500_s25  ;;  %s32_s28 = ssub.s32 %s2058_s21, %s2500_s25 }
   0xf   : > { %p30_p3 = scmp.ge.s32.totalorder %s2502_s26, 8  ;;  %p33_p4 = scmp.eq.s32.totalorder %s32_s28, 0 }
  0x10   : > { %p2165_p5 = por %p43_p2, %p42_p1  ;;  %s63_s30 = sadd.s32 1, %s2038_s16 }
  0x11   : > { %s2504_s26 = smov (%p30_p3, %s2502_s26), 0  ;;  %p70_p6 = scmp.ne.s32.totalorder %s2038_s16, %s2034_s15 }
  0x12   : > { %2478 = sst [smem:[#allocation10_spill]] %s2504_s26  ;;  %s59_s5 = ssub.s32 %s2062_s22, %s2504_s26 }
  0x13   : > { %s2173_s4 = scalar_select %p33_p4, %s2046_s18, %s35_s27  }
  0x14   : > { %s60_s6 = sor.u32 %s59_s5, %s32_s28  ;;  %p76_p7 = scmp.ne.s32.totalorder %s2034_s15, %s2030_s14 }
  0x15   : > { %2479 = sst [smem:[#allocation11_spill]] %s2173_s4  ;;  %p61_p8 = scmp.eq.s32.totalorder %s60_s6, 0 }
  0x16   : > { %p2181_p9 = por %p70_p6, %p43_p2  ;;  %p77_p10 = scmp.eq.s32.totalorder %s1473_s24, 0 }
  0x17   : > { %p113_p11 = scmp.eq.s32.totalorder %s59_s5, 0  ;;  %s115_s10 = sadd.s32 1, %s2026_s13 }
  0x18   : > { %s2188_s8 = scalar_select %p61_p8, %s2038_s16, %s63_s30  }
  0x19   : > { %p2190_p12 = por %p77_p10, %p76_p7  ;;  %p125_p13 = scmp.ne.s32.totalorder %s2026_s13, %s2022_s12 }
  0x1a   : > { %s2196_s11 = scalar_select %p113_p11, %s2026_s13, %s115_s10  }
  0x1b   : > { %p126_p0 = scmp.eq.s32.totalorder %s1473_s24, 63  ;;  %p1476_p2 = scmp.ge.s32.totalorder %s2066_s23, 64 }
  0x1d   : > { %p2202_p1 = por %p126_p0, %p125_p13  ;;  %148 = sbr.rel (%p1476_p2) target bundleno = 77 (0x4d), region = 16 }
  0x1f   : > { %s2482_s14 = scalar_select %p2202_p1, 1, 0 }
  0x24   : > { %151 = sbr.rel (!%p2165_p5) target bundleno = 48 (0x30), region = 20  ;;  %s153_s27 = sand.u32 (%p2165_p5), 1, %s2046_s18  }
  0x25   : > { %s1629_s28 = sshll.u32 (%p2165_p5), %s2058_s21, 4  ;;  %s1477_s30 = sshll.u32 (%p2165_p5), %s153_s27, 5 }
  0x26   : > { %s2483_s0 = sld [smem:[#allocation12_spill]] (%p2165_p5)  ;;  %s155_s24 = scalar_lea.vmem (%p2165_p5), [#allocation3], %s1477_s30 }
  0x2c   : > { %s158_s10 = scalar_lea.vmem %s2483_s0, %s1629_s28 }
  0x2d   : > { %v171_v0 = vld [vmem:[%s158_s10] sm:$0xff]  ;;  %v173_v1 = vld [vmem:[%s158_s10 + $0x8] sm:$0xff] }
  0x2e   : > { %v175_v2 = vld [vmem:[%s158_s10 + $0x80] sm:$0xff]  ;;  %172 = vst [vmem:[%s155_s24] sm:$0xff] %v171_v0  ;;  %174 = vst [vmem:[%s155_s24 + $0x8] sm:$0xff] %v173_v1  ;;  %v177_v3 = vld [vmem:[%s158_s10 + $0x88] sm:$0xff] }
  0x2f   : > { %176 = vst [vmem:[%s155_s24 + $0x10] sm:$0xff] %v175_v2  ;;  %178 = vst [vmem:[%s155_s24 + $0x18] sm:$0xff] %v177_v3 }
  0x30 PF: > { %s185_s29 = sand.u32 1, %s2038_s16   ;;  %s1482_s27 = sshll.u32 %s2062_s22, 2 }
  0x31   : > { %s1480_s26 = sshll.u32 %s185_s29, 10  ;;  %s1630_s25 = sshll.u32 %s2058_s21, 11 }
  0x32   : > { %s196_s5 = sadd.s32 %s1630_s25, %s1482_s27  ;;  %s189_s28 = scalar_lea.vmem [#allocation4], %s1480_s26 }
  0x33   : > { %s199_s6 = sshll.u32 %s189_s28, 4  ;;  %s1484_s0 = sshll.u32 %s196_s5, 6  ;;  %s2217_s6 = int_to_ptr.vmem [resolvable:$true] %s199_s6 }
  0x34   : > { %s2222_s10 = scalar_lea.hbm %s2468_s1, %s1484_s0  ;;  %s2224_s24 = scalar_lea.sflag [#allocation5], %s185_s29 }
  0x35   : > { %s1940_s22 = scalar_lea.hbm %s2222_s10, 16384  ;;  %s1944_s27 = scalar_lea.hbm %s2468_s1, 1048576 }
  0x36   : > { %p1941_p3 = scmp.ne.s32.totalorder %s2222_s10, %s1940_s22  ;;  %p1945_p6 = scmp.lt.u32.totalorder %s2222_s10, %s2468_s1 }
  0x37   : > { %p1946_p7 = scmp.lt.u32.totalorder %s1944_s27, %s1940_s22  ;;  %p1948_p10 = scmp.lt.u32.totalorder %s1940_s22, %s2222_s10 }
  0x38   : > { %p1942_p4 = pnand %p1941_p3, %p2181_p9 }
  0x39   : > { %p1947_p8 = por %p1946_p7, %p1945_p6 }
  0x3a   : > { %p1943_p5 = pneg %p1942_p4 }
  0x3b   : > { %p1949_p11 = por %p1948_p10, %p1947_p8 }
  0x3d   : > { %p1950_p13 = pnand %p1949_p11, %p1943_p5 }
  0x3f   : > { %1953 = shalt.err (!%p1950_p13)
}
  0x40   : > { %s1954_s0 = scalar_lea.vmem %s2217_s6, 16384  ;;  %s2068_s4 = smov [#allocation4]  }
  0x41   : > { %p1955_p0 = scmp.ne.s32.totalorder %s2217_s6, %s1954_s0  ;;  %s1958_s29 = sshll.u32 %s2068_s4, 4  ;;  %s1959_s29 = int_to_ptr.vmem [resolvable:$false] %s1958_s29 }
  0x42   : > { %s1960_s30 = scalar_lea.vmem %s1959_s29, 32768  ;;  %p1961_p4 = scmp.lt.s32.totalorder %s2217_s6, %s1959_s29 }
  0x43   : > { %p1956_p2 = pnand %p1955_p0, %p2181_p9  ;;  %p1962_p1 = scmp.lt.s32.totalorder %s1960_s30, %s1954_s0 }
  0x45   : > { %p1957_p3 = pneg %p1956_p2  ;;  %p1963_p6 = por %p1962_p1, %p1961_p4 }
  0x47   : > { %p1964_p7 = pnand %p1963_p6, %p1957_p3 }
  0x49   : > { %1967 = shalt.err (!%p1964_p7)
}
  0x4a   : > { %s2069_s22 = smov 2048   ;;  %s2070_s25 = smov 256  }
  0x4b   : > { %s2071_s26 = smov 16  }
  0x4c   : > { %1640 = dma.hbm_to_vmem [thread:$0]  (%p2181_p9), %s2222_s10, 16384, %s2217_s6, %s2224_s24, %s2069_s22, %s2070_s25, %s2071_s26  }
  0x4d PF: > { %p1485_p5 = scmp.ge.s32.totalorder %s2066_s23, 1  ;;  %p215_p8 = scmp.lt.s32.totalorder %s2066_s23, 65 }
  0x4f   : > { %p216_p10 = pnand %p1485_p5, %p215_p8 }
  0x50   : > { %s222_s27 = sand.u32 (!%p216_p10), 1, %s2042_s17   ;;  %s228_s5 = sand.u32 (!%p216_p10), 1, %s2034_s15  }
  0x51   : > { %219 = sbr.rel (%p216_p10) target bundleno = 468 (0x1d4), region = 51  ;;  %s1486_s28 = sshll.u32 (!%p216_p10), %s222_s27, 5 }
  0x52   : > { %s1487_s0 = sshll.u32 (!%p216_p10), %s228_s5, 10  ;;  %s2252_s4 = scalar_lea.vmem (!%p216_p10), [#allocation3], %s1486_s28 }
  0x53   : > { %s229_s29 = scalar_lea.sflag (!%p216_p10), [#allocation5], %s228_s5  ;;  %s2254_s30 = scalar_lea.vmem (!%p216_p10), [#allocation4], %s1487_s0 }
  0x58   : > { %2017 = dma.done.wait (%p2190_p12), %s229_s29, 16384  }
  0x59   : > { %2019 = vsyncadd (%p2190_p12), %s229_s29, 4294950912  ;;  %s259_s7 = sand.u32 1, %s2022_s12   ;;  %s1489_s6 = sshll.u32 %s2054_s20, 2 }
  0x5a   : > { %s1488_s10 = sshll.u32 %s259_s7, 6  ;;  %p266_p9 = scmp.lt.s32.totalorder %s1489_s6, 31 }
  0x5b   : > { %s2268_s25 = scalar_lea.vmem [#allocation6], %s1488_s10  ;;  %p1490_p1 = scmp.ne.s32.totalorder %s2050_s19, 0 }
  0x5c   : > { %s2506_s6 = smov (!%p266_p9, %s1489_s6), 31  ;;  %v2072_v4 = vmov (!%p1490_p1), 0.0  }
  0x5d   : > { %s268_s22 = scalar_lea.vmem %s2469_s2, %s2506_s6  ;;  %274 = sbr.rel (%p1490_p1) target bundleno = 100 (0x64), region = 63  ;;  %275 = vst [vmem:[#allocation2] sm:$0xff] (!%p1490_p1), %v2072_v4  ;;  %276 = vst [vmem:[#allocation2 + $0x8] sm:$0xff] (!%p1490_p1), %v2072_v4 }
  0x5e   : > { %277 = vst [vmem:[#allocation2 + $0x10] sm:$0xff] (!%p1490_p1), %v2072_v4  ;;  %278 = vst [vmem:[#allocation2 + $0x18] sm:$0xff] (!%p1490_p1), %v2072_v4 }
  0x5f   : > { %279 = vst [vmem:[#allocation2 + $0x20] sm:$0xff] (!%p1490_p1), %v2072_v4  ;;  %280 = vst [vmem:[#allocation2 + $0x28] sm:$0xff] (!%p1490_p1), %v2072_v4 }
  0x60   : > { %281 = vst [vmem:[#allocation2 + $0x30] sm:$0xff] (!%p1490_p1), %v2072_v4  ;;  %282 = vst [vmem:[#allocation2 + $0x38] sm:$0xff] (!%p1490_p1), %v2072_v4 }
  0x64 PF: > { %v1742_v5 = vld [vmem:[%s2254_s30 + $0x4] ss:$16 sps:$4 sm:$0xff]   ;;  %v1744_v6 = vld [vmem:[%s2254_s30 + $0xc] ss:$16 sps:$4 sm:$0xff]   ;;  %v1746_v7 = vld [vmem:[%s2254_s30] ss:$16 sps:$4 sm:$0xff]  }
  0x65   : > { %1083 = vmatprep.subr.bf16.mxu0 %v1742_v5  ;;  %v1747_v8 = vld [vmem:[%s2254_s30 + $0x8] ss:$16 sps:$4 sm:$0xff]   ;;  %1169 = vmatprep.subr.bf16.mxu1 %v1744_v6  ;;  %v1748_v9 = vld [vmem:[%s2254_s30 + $0x24] ss:$16 sps:$4 sm:$0xff]   ;;  %v1750_v10 = vld [vmem:[%s2254_s30 + $0x2c] ss:$16 sps:$4 sm:$0xff]  }
  0x66   : > { %1084 = vmatpush1.bf16.msra.mxu0 %v1746_v7  ;;  %1170 = vmatpush1.bf16.msra.mxu1 %v1747_v8  ;;  %v1752_v11 = vld [vmem:[%s2254_s30 + $0x20] ss:$16 sps:$4 sm:$0xff]   ;;  %v1753_v12 = vld [vmem:[%s2254_s30 + $0x28] ss:$16 sps:$4 sm:$0xff]   ;;  %v1754_v13 = vld [vmem:[%s2254_s30 + $0x44] ss:$16 sps:$4 sm:$0xff]  }
  0x67   : > { %1085 = vmatprep.subr.bf16.mxu0 %v1748_v9  ;;  %1171 = vmatprep.subr.bf16.mxu1 %v1750_v10  ;;  %v1756_v14 = vld [vmem:[%s2254_s30 + $0x4c] ss:$16 sps:$4 sm:$0xff]   ;;  %v1758_v15 = vld [vmem:[%s2254_s30 + $0x40] ss:$16 sps:$4 sm:$0xff]   ;;  %v1759_v16 = vld [vmem:[%s2254_s30 + $0x48] ss:$16 sps:$4 sm:$0xff]  }
  0x68   : > { %v1760_v17 = vld [vmem:[%s2254_s30 + $0x64] ss:$16 sps:$4 sm:$0xff]   ;;  %v1762_v18 = vld [vmem:[%s2254_s30 + $0x6c] ss:$16 sps:$4 sm:$0xff]   ;;  %v1764_v19 = vld [vmem:[%s2254_s30 + $0x60] ss:$16 sps:$4 sm:$0xff]  }
  0x69   : > { %v1765_v20 = vld [vmem:[%s2254_s30 + $0x68] ss:$16 sps:$4 sm:$0xff]   ;;  %v1766_v21 = vld [vmem:[%s2254_s30 + $0x84] ss:$16 sps:$4 sm:$0xff]   ;;  %v1768_v22 = vld [vmem:[%s2254_s30 + $0x8c] ss:$16 sps:$4 sm:$0xff]  }
  0x6a   : > { %1086 = vmatpush1.bf16.msra.mxu0 %v1752_v11  ;;  %1172 = vmatpush1.bf16.msra.mxu1 %v1753_v12  ;;  %v1770_v23 = vld [vmem:[%s2254_s30 + $0x80] ss:$16 sps:$4 sm:$0xff]   ;;  %v1771_v24 = vld [vmem:[%s2254_s30 + $0x88] ss:$16 sps:$4 sm:$0xff]   ;;  %v1772_v25 = vld [vmem:[%s2254_s30 + $0xa4] ss:$16 sps:$4 sm:$0xff]  }
  0x6b   : > { %1087 = vmatprep.subr.bf16.mxu0 %v1754_v13  ;;  %1173 = vmatprep.subr.bf16.mxu1 %v1756_v14  ;;  %v1774_v26 = vld [vmem:[%s2254_s30 + $0xac] ss:$16 sps:$4 sm:$0xff]   ;;  %v1776_v27 = vld [vmem:[%s2254_s30 + $0xa0] ss:$16 sps:$4 sm:$0xff]   ;;  %v1777_v28 = vld [vmem:[%s2254_s30 + $0xa8] ss:$16 sps:$4 sm:$0xff]  }
  0x6c   : > { %v1778_v29 = vld [vmem:[%s2254_s30 + $0xc4] ss:$16 sps:$4 sm:$0xff]   ;;  %v1780_v30 = vld [vmem:[%s2254_s30 + $0xcc] ss:$16 sps:$4 sm:$0xff]   ;;  %v1782_v31 = vld [vmem:[%s2254_s30 + $0xc0] ss:$16 sps:$4 sm:$0xff]  }
  0x6d   : > { %v1783_v32 = vld [vmem:[%s2254_s30 + $0xc8] ss:$16 sps:$4 sm:$0xff]   ;;  %v1784_v33 = vld [vmem:[%s2254_s30 + $0xe4] ss:$16 sps:$4 sm:$0xff]   ;;  %v1786_v34 = vld [vmem:[%s2254_s30 + $0xec] ss:$16 sps:$4 sm:$0xff]  }
  0x6e   : > { %1088 = vmatpush1.bf16.msra.mxu0 %v1758_v15  ;;  %1174 = vmatpush1.bf16.msra.mxu1 %v1759_v16  ;;  %v1788_v35 = vld [vmem:[%s2254_s30 + $0xe0] ss:$16 sps:$4 sm:$0xff]   ;;  %v1789_v36 = vld [vmem:[%s2254_s30 + $0xe8] ss:$16 sps:$4 sm:$0xff]   ;;  %v1790_v37 = vld [vmem:[%s2254_s30 + $0x104] ss:$16 sps:$4 sm:$0xff]  }
  0x6f   : > { %1089 = vmatprep.subr.bf16.mxu0 %v1760_v17  ;;  %1175 = vmatprep.subr.bf16.mxu1 %v1762_v18  ;;  %v1792_v38 = vld [vmem:[%s2254_s30 + $0x10c] ss:$16 sps:$4 sm:$0xff]   ;;  %v1794_v39 = vld [vmem:[%s2254_s30 + $0x100] ss:$16 sps:$4 sm:$0xff]   ;;  %v1795_v40 = vld [vmem:[%s2254_s30 + $0x108] ss:$16 sps:$4 sm:$0xff]  }
  0x70   : > { %v1796_v41 = vld [vmem:[%s2254_s30 + $0x124] ss:$16 sps:$4 sm:$0xff]   ;;  %v1798_v42 = vld [vmem:[%s2254_s30 + $0x12c] ss:$16 sps:$4 sm:$0xff]   ;;  %v1800_v43 = vld [vmem:[%s2254_s30 + $0x120] ss:$16 sps:$4 sm:$0xff]  }
  0x71   : > { %v1801_v44 = vld [vmem:[%s2254_s30 + $0x128] ss:$16 sps:$4 sm:$0xff]   ;;  %v1802_v45 = vld [vmem:[%s2254_s30 + $0x144] ss:$16 sps:$4 sm:$0xff]   ;;  %v1804_v46 = vld [vmem:[%s2254_s30 + $0x14c] ss:$16 sps:$4 sm:$0xff]  }
  0x72   : > { %1090 = vmatpush1.bf16.msra.mxu0 %v1764_v19  ;;  %1176 = vmatpush1.bf16.msra.mxu1 %v1765_v20  ;;  %v1806_v47 = vld [vmem:[%s2254_s30 + $0x140] ss:$16 sps:$4 sm:$0xff]   ;;  %v1807_v48 = vld [vmem:[%s2254_s30 + $0x148] ss:$16 sps:$4 sm:$0xff]   ;;  %v1808_v49 = vld [vmem:[%s2254_s30 + $0x164] ss:$16 sps:$4 sm:$0xff]  }
  0x73   : > { %1091 = vmatprep.subr.bf16.mxu0 %v1766_v21  ;;  %1177 = vmatprep.subr.bf16.mxu1 %v1768_v22  ;;  %v1810_v50 = vld [vmem:[%s2254_s30 + $0x16c] ss:$16 sps:$4 sm:$0xff]   ;;  %v1812_v51 = vld [vmem:[%s2254_s30 + $0x160] ss:$16 sps:$4 sm:$0xff]   ;;  %v1813_v52 = vld [vmem:[%s2254_s30 + $0x168] ss:$16 sps:$4 sm:$0xff]  }
  0x74   : > { %v1840_v53 = vld [vmem:[%s2252_s4 + $0x4] ss:$16 sps:$4 sm:$0xff]   ;;  %v1816_v55 = vld [vmem:[%s2254_s30 + $0x18c] ss:$16 sps:$4 sm:$0xff]   ;;  %v1818_v56 = vld [vmem:[%s2254_s30 + $0x180] ss:$16 sps:$4 sm:$0xff]  }
  0x75   : > { %v1814_v54 = vld [vmem:[%s2254_s30 + $0x184] ss:$16 sps:$4 sm:$0xff]   ;;  %1115 = vmatprep.mubr.bf16.mxu0 %v1840_v53  ;;  %1201 = vmatprep.mubr.bf16.mxu1 %v1840_v53  ;;  %v1819_v57 = vld [vmem:[%s2254_s30 + $0x188] ss:$16 sps:$4 sm:$0xff]   ;;  %v1822_v59 = vld [vmem:[%s2254_s30 + $0x1ac] ss:$16 sps:$4 sm:$0xff]  }
  0x76   : > { %1092 = vmatpush1.bf16.msra.mxu0 %v1770_v23  ;;  %1178 = vmatpush1.bf16.msra.mxu1 %v1771_v24  ;;  %v1820_v58 = vld [vmem:[%s2254_s30 + $0x1a4] ss:$16 sps:$4 sm:$0xff]   ;;  %v1824_v60 = vld [vmem:[%s2254_s30 + $0x1a0] ss:$16 sps:$4 sm:$0xff]   ;;  %v1825_v61 = vld [vmem:[%s2254_s30 + $0x1a8] ss:$16 sps:$4 sm:$0xff]  }
  0x77   : > { %1093 = vmatprep.subr.bf16.mxu0 %v1772_v25  ;;  %1179 = vmatprep.subr.bf16.mxu1 %v1774_v26  ;;  %v1826_v62 = vld [vmem:[%s2254_s30 + $0x1c4] ss:$16 sps:$4 sm:$0xff]   ;;  %v1828_v63 = vld [vmem:[%s2254_s30 + $0x1cc] ss:$16 sps:$4 sm:$0xff]   ;;  %v1830_v0 = vld [vmem:[%s2254_s30 + $0x1c0] ss:$16 sps:$4 sm:$0xff]  }
  0x78   : > { %v1831_v1 = vld [vmem:[%s2254_s30 + $0x1c8] ss:$16 sps:$4 sm:$0xff]   ;;  %v1832_v2 = vld [vmem:[%s2254_s30 + $0x1e4] ss:$16 sps:$4 sm:$0xff]   ;;  %v1834_v3 = vld [vmem:[%s2254_s30 + $0x1ec] ss:$16 sps:$4 sm:$0xff]  }
  0x79   : > { %v1836_v4 = vld [vmem:[%s2254_s30 + $0x1e0] ss:$16 sps:$4 sm:$0xff]   ;;  %v1837_v5 = vld [vmem:[%s2254_s30 + $0x1e8] ss:$16 sps:$4 sm:$0xff]   ;;  %v1843_v6 = vld [vmem:[%s2254_s30 + $0x204] ss:$16 sps:$4 sm:$0xff]  }
  0x7a   : > { %1094 = vmatpush1.bf16.msra.mxu0 %v1776_v27  ;;  %1180 = vmatpush1.bf16.msra.mxu1 %v1777_v28  ;;  %v1846_v7 = vld [vmem:[%s2254_s30 + $0x20c] ss:$16 sps:$4 sm:$0xff]   ;;  %v1838_v8 = vld [vmem:[%s2252_s4] ss:$16 sps:$4 sm:$0xff]   ;;  %v1844_v10 = vld [vmem:[%s2254_s30 + $0x208] ss:$16 sps:$4 sm:$0xff]  }
  0x7b   : > { %1095 = vmatprep.subr.bf16.mxu0 %v1778_v29  ;;  %1181 = vmatprep.subr.bf16.mxu1 %v1780_v30  ;;  %v1841_v9 = vld [vmem:[%s2254_s30 + $0x200] ss:$16 sps:$4 sm:$0xff]   ;;  %v1849_v11 = vld [vmem:[%s2254_s30 + $0x224] ss:$16 sps:$4 sm:$0xff]   ;;  %v1852_v12 = vld [vmem:[%s2254_s30 + $0x22c] ss:$16 sps:$4 sm:$0xff]  }
  0x7c   : > { %v1847_v13 = vld [vmem:[%s2254_s30 + $0x220] ss:$16 sps:$4 sm:$0xff]   ;;  %v1850_v14 = vld [vmem:[%s2254_s30 + $0x228] ss:$16 sps:$4 sm:$0xff]   ;;  %v1855_v15 = vld [vmem:[%s2254_s30 + $0x244] ss:$16 sps:$4 sm:$0xff]  }
  0x7d   : > { %v1858_v16 = vld [vmem:[%s2254_s30 + $0x24c] ss:$16 sps:$4 sm:$0xff]   ;;  %v1853_v17 = vld [vmem:[%s2254_s30 + $0x240] ss:$16 sps:$4 sm:$0xff]   ;;  %v1856_v18 = vld [vmem:[%s2254_s30 + $0x248] ss:$16 sps:$4 sm:$0xff]  }
  0x7e   : > { %1096 = vmatpush1.bf16.msra.mxu0 %v1782_v31  ;;  %1182 = vmatpush1.bf16.msra.mxu1 %v1783_v32  ;;  %v1861_v19 = vld [vmem:[%s2254_s30 + $0x264] ss:$16 sps:$4 sm:$0xff]   ;;  %v1864_v20 = vld [vmem:[%s2254_s30 + $0x26c] ss:$16 sps:$4 sm:$0xff]   ;;  %v1859_v21 = vld [vmem:[%s2254_s30 + $0x260] ss:$16 sps:$4 sm:$0xff]  }
  0x7f   : > { %1097 = vmatprep.subr.bf16.mxu0 %v1784_v33  ;;  %1183 = vmatprep.subr.bf16.mxu1 %v1786_v34  ;;  %v1862_v22 = vld [vmem:[%s2254_s30 + $0x268] ss:$16 sps:$4 sm:$0xff]   ;;  %v1867_v23 = vld [vmem:[%s2254_s30 + $0x284] ss:$16 sps:$4 sm:$0xff]   ;;  %v1870_v24 = vld [vmem:[%s2254_s30 + $0x28c] ss:$16 sps:$4 sm:$0xff]  }
  0x80   : > { %v1865_v25 = vld [vmem:[%s2254_s30 + $0x280] ss:$16 sps:$4 sm:$0xff]   ;;  %v1868_v26 = vld [vmem:[%s2254_s30 + $0x288] ss:$16 sps:$4 sm:$0xff]   ;;  %v1873_v27 = vld [vmem:[%s2254_s30 + $0x2a4] ss:$16 sps:$4 sm:$0xff]  }
  0x81   : > { %v1876_v28 = vld [vmem:[%s2254_s30 + $0x2ac] ss:$16 sps:$4 sm:$0xff]   ;;  %v1871_v29 = vld [vmem:[%s2254_s30 + $0x2a0] ss:$16 sps:$4 sm:$0xff]   ;;  %v1874_v30 = vld [vmem:[%s2254_s30 + $0x2a8] ss:$16 sps:$4 sm:$0xff]  }
  0x82   : > { %1098 = vmatpush1.bf16.msra.mxu0 %v1788_v35  ;;  %1184 = vmatpush1.bf16.msra.mxu1 %v1789_v36  ;;  %v1879_v31 = vld [vmem:[%s2254_s30 + $0x2c4] ss:$16 sps:$4 sm:$0xff]   ;;  %v1882_v32 = vld [vmem:[%s2254_s30 + $0x2cc] ss:$16 sps:$4 sm:$0xff]   ;;  %v1877_v34 = vld [vmem:[%s2254_s30 + $0x2c0] ss:$16 sps:$4 sm:$0xff]  }
  0x83   : > { %1099 = vmatprep.subr.bf16.mxu0 %v1790_v37  ;;  %1185 = vmatprep.subr.bf16.mxu1 %v1792_v38  ;;  %v1939_v33 = vld [vmem:[%s2252_s4 + $0xc] ss:$16 sps:$4 sm:$0xff]   ;;  %v1880_v35 = vld [vmem:[%s2254_s30 + $0x2c8] ss:$16 sps:$4 sm:$0xff]   ;;  %v1885_v36 = vld [vmem:[%s2254_s30 + $0x2e4] ss:$16 sps:$4 sm:$0xff]  }
  0x84   : > { %v1888_v37 = vld [vmem:[%s2254_s30 + $0x2ec] ss:$16 sps:$4 sm:$0xff]   ;;  %v1883_v38 = vld [vmem:[%s2254_s30 + $0x2e0] ss:$16 sps:$4 sm:$0xff]   ;;  %p1623_p12 = scmp.ne.s32.totalorder %s2050_s19, 7 }
  0x85   : > { %v1912_v53 = vld [vmem:[%s2254_s30 + $0x36c] ss:$16 sps:$4 sm:$0xff]  }
  0x86   : > { %1100 = vmatpush1.bf16.msra.mxu0 %v1794_v39  ;;  %1186 = vmatpush1.bf16.msra.mxu1 %v1795_v40  ;;  %v1886_v39 = vld [vmem:[%s2254_s30 + $0x2e8] ss:$16 sps:$4 sm:$0xff]   ;;  %v1891_v40 = vld [vmem:[%s2254_s30 + $0x304] ss:$16 sps:$4 sm:$0xff]  }
  0x87   : > { %1101 = vmatprep.subr.bf16.mxu0 %v1796_v41  ;;  %1187 = vmatprep.subr.bf16.mxu1 %v1798_v42  ;;  %v1894_v41 = vld [vmem:[%s2254_s30 + $0x30c] ss:$16 sps:$4 sm:$0xff]   ;;  %v1889_v42 = vld [vmem:[%s2254_s30 + $0x300] ss:$16 sps:$4 sm:$0xff]  }
  0x8a   : > { %1102 = vmatpush1.bf16.msra.mxu0 %v1800_v43  ;;  %1188 = vmatpush1.bf16.msra.mxu1 %v1801_v44  ;;  %v1892_v43 = vld [vmem:[%s2254_s30 + $0x308] ss:$16 sps:$4 sm:$0xff]   ;;  %v1897_v44 = vld [vmem:[%s2254_s30 + $0x324] ss:$16 sps:$4 sm:$0xff]  }
  0x8b   : > { %1103 = vmatprep.subr.bf16.mxu0 %v1802_v45  ;;  %1189 = vmatprep.subr.bf16.mxu1 %v1804_v46  ;;  %v1900_v45 = vld [vmem:[%s2254_s30 + $0x32c] ss:$16 sps:$4 sm:$0xff]   ;;  %v1895_v46 = vld [vmem:[%s2254_s30 + $0x320] ss:$16 sps:$4 sm:$0xff]  }
  0x8e   : > { %1104 = vmatpush1.bf16.msra.mxu0 %v1806_v47  ;;  %1190 = vmatpush1.bf16.msra.mxu1 %v1807_v48  ;;  %v1898_v47 = vld [vmem:[%s2254_s30 + $0x328] ss:$16 sps:$4 sm:$0xff]   ;;  %v1903_v48 = vld [vmem:[%s2254_s30 + $0x344] ss:$16 sps:$4 sm:$0xff]  }
  0x8f   : > { %1105 = vmatprep.subr.bf16.mxu0 %v1808_v49  ;;  %1191 = vmatprep.subr.bf16.mxu1 %v1810_v50  ;;  %v1906_v49 = vld [vmem:[%s2254_s30 + $0x34c] ss:$16 sps:$4 sm:$0xff]   ;;  %v1901_v50 = vld [vmem:[%s2254_s30 + $0x340] ss:$16 sps:$4 sm:$0xff]  }
  0x92   : > { %1106 = vmatpush1.bf16.msra.mxu0 %v1812_v51  ;;  %1192 = vmatpush1.bf16.msra.mxu1 %v1813_v52  ;;  %v1904_v51 = vld [vmem:[%s2254_s30 + $0x348] ss:$16 sps:$4 sm:$0xff]   ;;  %v1909_v52 = vld [vmem:[%s2254_s30 + $0x364] ss:$16 sps:$4 sm:$0xff]  }
  0x93   : > { %1107 = vmatprep.subr.bf16.mxu0 %v1814_v54  ;;  %1193 = vmatprep.subr.bf16.mxu1 %v1816_v55  ;;  %v1907_v54 = vld [vmem:[%s2254_s30 + $0x360] ss:$16 sps:$4 sm:$0xff]   ;;  %v1910_v55 = vld [vmem:[%s2254_s30 + $0x368] ss:$16 sps:$4 sm:$0xff]  }
  0x96   : > { %1108 = vmatpush1.bf16.msra.mxu0 %v1818_v56  ;;  %1194 = vmatpush1.bf16.msra.mxu1 %v1819_v57  ;;  %v1915_v56 = vld [vmem:[%s2254_s30 + $0x384] ss:$16 sps:$4 sm:$0xff]   ;;  %v1918_v57 = vld [vmem:[%s2254_s30 + $0x38c] ss:$16 sps:$4 sm:$0xff]  }
  0x97   : > { %1109 = vmatprep.subr.bf16.mxu0 %v1820_v58  ;;  %1195 = vmatprep.subr.bf16.mxu1 %v1822_v59  ;;  %v1913_v58 = vld [vmem:[%s2254_s30 + $0x380] ss:$16 sps:$4 sm:$0xff]   ;;  %v1916_v59 = vld [vmem:[%s2254_s30 + $0x388] ss:$16 sps:$4 sm:$0xff]  }
  0x9a   : > { %1110 = vmatpush1.bf16.msra.mxu0 %v1824_v60  ;;  %1196 = vmatpush1.bf16.msra.mxu1 %v1825_v61  ;;  %v1921_v60 = vld [vmem:[%s2254_s30 + $0x3a4] ss:$16 sps:$4 sm:$0xff]   ;;  %v1924_v61 = vld [vmem:[%s2254_s30 + $0x3ac] ss:$16 sps:$4 sm:$0xff]  }
  0x9b   : > { %1111 = vmatprep.subr.bf16.mxu0 %v1826_v62  ;;  %1197 = vmatprep.subr.bf16.mxu1 %v1828_v63  ;;  %v1919_v62 = vld [vmem:[%s2254_s30 + $0x3a0] ss:$16 sps:$4 sm:$0xff]   ;;  %v1922_v63 = vld [vmem:[%s2254_s30 + $0x3a8] ss:$16 sps:$4 sm:$0xff]  }
  0x9e   : > { %1112 = vmatpush1.bf16.msra.mxu0 %v1830_v0  ;;  %1198 = vmatpush1.bf16.msra.mxu1 %v1831_v1  ;;  %v1927_v0 = vld [vmem:[%s2254_s30 + $0x3c4] ss:$16 sps:$4 sm:$0xff]   ;;  %v1930_v1 = vld [vmem:[%s2254_s30 + $0x3cc] ss:$16 sps:$4 sm:$0xff]  }
  0x9f   : > { %1113 = vmatprep.subr.bf16.mxu0 %v1832_v2  ;;  %1199 = vmatprep.subr.bf16.mxu1 %v1834_v3  ;;  %v1925_v2 = vld [vmem:[%s2254_s30 + $0x3c0] ss:$16 sps:$4 sm:$0xff]   ;;  %v1928_v3 = vld [vmem:[%s2254_s30 + $0x3c8] ss:$16 sps:$4 sm:$0xff]  }
  0xa2   : > { %1114 = vmatpush1.bf16.msra.mxu0 %v1836_v4  ;;  %1200 = vmatpush1.bf16.msra.mxu1 %v1837_v5  ;;  %v1933_v4 = vld [vmem:[%s2254_s30 + $0x3e4] ss:$16 sps:$4 sm:$0xff]   ;;  %v1936_v5 = vld [vmem:[%s2254_s30 + $0x3ec] ss:$16 sps:$4 sm:$0xff]  }
  0xa3   : > { %1126 = vmatprep.subr.bf16.mxu0 %v1843_v6  ;;  %1212 = vmatprep.subr.bf16.mxu1 %v1846_v7  ;;  %v1931_v6 = vld [vmem:[%s2254_s30 + $0x3e0] ss:$16 sps:$4 sm:$0xff]   ;;  %v1934_v7 = vld [vmem:[%s2254_s30 + $0x3e8] ss:$16 sps:$4 sm:$0xff]  }
  0xa5   : > { %1116 = vmatmul.mubr.bf16.vlgmr.msra.gmra.mrb[0].mxu0 %v1838_v8  ;;  %1202 = vmatmul.mubr.bf16.vlgmr.msra.gmra.mrb[0].mxu1 %v1838_v8  ;;  %v1937_v8 = vld [vmem:[%s2252_s4 + $0x8] ss:$16 sps:$4 sm:$0xff]  }
  0xa6   : > { %1127 = vmatpush1.bf16.msra.mxu0 %v1841_v9  ;;  %1213 = vmatpush1.bf16.msra.mxu1 %v1844_v10  ;;  %v283_v9 = vld [vmem:[#allocation2] sm:$0xff]  ;;  %v285_v10 = vld [vmem:[#allocation2 + $0x10] sm:$0xff] }
  0xa7   : > { %1128 = vmatprep.subr.bf16.mxu0 %v1849_v11  ;;  %1214 = vmatprep.subr.bf16.mxu1 %v1852_v12  ;;  %v284_v11 = vld [vmem:[#allocation2 + $0x8] sm:$0xff]  ;;  %v286_v12 = vld [vmem:[#allocation2 + $0x18] sm:$0xff] }
  0xa8   : > { %1158 = vmatprep.mubr.bf16.mxu0 %v1939_v33  ;;  %1244 = vmatprep.mubr.bf16.mxu1 %v1939_v33  ;;  %v1285_v33 = vlaneseq (!%p1623_p12) }
  0xaa   : > { %1129 = vmatpush1.bf16.msra.mxu0 %v1847_v13  ;;  %1215 = vmatpush1.bf16.msra.mxu1 %v1850_v14 }
  0xab   : > { %1130 = vmatprep.subr.bf16.mxu0 %v1855_v15  ;;  %1216 = vmatprep.subr.bf16.mxu1 %v1858_v16  ;;  %v287_v15 = vld [vmem:[#allocation2 + $0x20] sm:$0xff]  ;;  %v289_v16 = vld [vmem:[#allocation2 + $0x30] sm:$0xff] }
  0xae   : > { %1131 = vmatpush1.bf16.msra.mxu0 %v1853_v17  ;;  %1217 = vmatpush1.bf16.msra.mxu1 %v1856_v18 }
  0xaf   : > { %1132 = vmatprep.subr.bf16.mxu0 %v1861_v19  ;;  %1218 = vmatprep.subr.bf16.mxu1 %v1864_v20 }
  0xb2   : > { %1133 = vmatpush1.bf16.msra.mxu0 %v1859_v21  ;;  %1219 = vmatpush1.bf16.msra.mxu1 %v1862_v22  ;;  %v288_v21 = vld [vmem:[#allocation2 + $0x28] sm:$0xff]  ;;  %v290_v22 = vld [vmem:[#allocation2 + $0x38] sm:$0xff] }
  0xb3   : > { %1134 = vmatprep.subr.bf16.mxu0 %v1867_v23  ;;  %1220 = vmatprep.subr.bf16.mxu1 %v1870_v24 }
  0xb6   : > { %1135 = vmatpush1.bf16.msra.mxu0 %v1865_v25  ;;  %1221 = vmatpush1.bf16.msra.mxu1 %v1868_v26 }
  0xb7   : > { %1136 = vmatprep.subr.bf16.mxu0 %v1873_v27  ;;  %1222 = vmatprep.subr.bf16.mxu1 %v1876_v28 }
  0xba   : > { %1137 = vmatpush1.bf16.msra.mxu0 %v1871_v29  ;;  %1223 = vmatpush1.bf16.msra.mxu1 %v1874_v30 }
  0xbb   : > { %1138 = vmatprep.subr.bf16.mxu0 %v1879_v31  ;;  %1224 = vmatprep.subr.bf16.mxu1 %v1882_v32 }
  0xbe   : > { %1139 = vmatpush1.bf16.msra.mxu0 %v1877_v34  ;;  %1225 = vmatpush1.bf16.msra.mxu1 %v1880_v35  ;;  %v1286_v34 = vshrl.u32 (!%p1623_p12), %v1285_v33, 7  ;;  %v1283_v35 = vld [vmem:[%s268_s22] sm:$0xf] (!%p1623_p12) }
  0xbf   : > { %1140 = vmatprep.subr.bf16.mxu0 %v1885_v36  ;;  %1226 = vmatprep.subr.bf16.mxu1 %v1888_v37 }
  0xc0   : > { %v1287_v37 = vsub.s32 (!%p1623_p12), 0, %v1286_v34 }
  0xc2   : > { %1141 = vmatpush1.bf16.msra.mxu0 %v1883_v38  ;;  %1227 = vmatpush1.bf16.msra.mxu1 %v1886_v39  ;;  %v1291_v39 = vsub.s32 (!%p1623_p12), 1, %v1286_v34 }
  0xc3   : > { %1142 = vmatprep.subr.bf16.mxu0 %v1891_v40  ;;  %1228 = vmatprep.subr.bf16.mxu1 %v1894_v41  ;;  %v1295_v40 = vsub.s32 (!%p1623_p12), 2, %v1286_v34  ;;  %v1299_v41 = vsub.s32 (!%p1623_p12), 3, %v1286_v34 }
  0xc6   : > { %1143 = vmatpush1.bf16.msra.mxu0 %v1889_v42  ;;  %1229 = vmatpush1.bf16.msra.mxu1 %v1892_v43 }
  0xc7   : > { %1144 = vmatprep.subr.bf16.mxu0 %v1897_v44  ;;  %1230 = vmatprep.subr.bf16.mxu1 %v1900_v45  ;;  %v1288_v45 = vrot.slane (!%p1623_p12), %v1283_v35, %v1287_v37 }
  0xca   : > { %1145 = vmatpush1.bf16.msra.mxu0 %v1895_v46  ;;  %1231 = vmatpush1.bf16.msra.mxu1 %v1898_v47  ;;  %v1292_v46 = vrot.slane (!%p1623_p12), %v1283_v35, %v1291_v39  ;;  %v1296_v47 = vrot.slane (!%p1623_p12), %v1283_v35, %v1295_v40 }
  0xcb   : > { %1146 = vmatprep.subr.bf16.mxu0 %v1903_v48  ;;  %1232 = vmatprep.subr.bf16.mxu1 %v1906_v49  ;;  %v1300_v48 = vrot.slane (!%p1623_p12), %v1283_v35, %v1299_v41 }
  0xce   : > { %1147 = vmatpush1.bf16.msra.mxu0 %v1901_v50  ;;  %1233 = vmatpush1.bf16.msra.mxu1 %v1904_v51 }
  0xcf   : > { %1148 = vmatprep.subr.bf16.mxu0 %v1909_v52  ;;  %1234 = vmatprep.subr.bf16.mxu1 %v1912_v53 }
  0xd2   : > { %1149 = vmatpush1.bf16.msra.mxu0 %v1907_v54  ;;  %1235 = vmatpush1.bf16.msra.mxu1 %v1910_v55 }
  0xd3   : > { %1150 = vmatprep.subr.bf16.mxu0 %v1915_v56  ;;  %1236 = vmatprep.subr.bf16.mxu1 %v1918_v57 }
  0xd6   : > { %1151 = vmatpush1.bf16.msra.mxu0 %v1913_v58  ;;  %1237 = vmatpush1.bf16.msra.mxu1 %v1916_v59 }
  0xd7   : > { %1152 = vmatprep.subr.bf16.mxu0 %v1921_v60  ;;  %1238 = vmatprep.subr.bf16.mxu1 %v1924_v61 }
  0xda   : > { %1153 = vmatpush1.bf16.msra.mxu0 %v1919_v62  ;;  %1239 = vmatpush1.bf16.msra.mxu1 %v1922_v63 }
  0xdb   : > { %1154 = vmatprep.subr.bf16.mxu0 %v1927_v0  ;;  %1240 = vmatprep.subr.bf16.mxu1 %v1930_v1 }
  0xde   : > { %1155 = vmatpush1.bf16.msra.mxu0 %v1925_v2  ;;  %1241 = vmatpush1.bf16.msra.mxu1 %v1928_v3 }
  0xdf   : > { %1156 = vmatprep.subr.bf16.mxu0 %v1933_v4  ;;  %1242 = vmatprep.subr.bf16.mxu1 %v1936_v5 }
  0xe2   : > { %1157 = vmatpush1.bf16.msra.mxu0 %v1931_v6  ;;  %1243 = vmatpush1.bf16.msra.mxu1 %v1934_v7 }
  0xe5   : > { %1159 = vmatmul.mubr.bf16.vlgmr.msra.gmra.mrb[0].mxu0 %v1937_v8  ;;  %1245 = vmatmul.mubr.bf16.vlgmr.msra.gmra.mrb[0].mxu1 %v1937_v8 }
 0x1b8   : > { %v1160_v13 = vpop.f32.mrb[0].mxu0  ;;  %v1246_v14 = vpop.f32.mrb[0].mxu1  ;;  %1274 = sbr.rel (%p1623_p12) target bundleno = 459 (0x1cb), region = 67 }
 0x1b9   : > { %v1255_v17 = vadd.f32 %v1160_v13, %v283_v9  ;;  %v1257_v18 = vadd.f32 %v1246_v14, %v285_v10  ;;  %v1162_v19 = vpop.f32.mrb[1].mxu0  ;;  %v1248_v20 = vpop.f32.mrb[1].mxu1 }
 0x1ba   : > { %v1256_v23 = vadd.f32 %v1162_v19, %v284_v11  ;;  %v1258_v24 = vadd.f32 %v1248_v20, %v286_v12  ;;  %v1164_v25 = vpop.f32.mrb[2].mxu0  ;;  %v1250_v26 = vpop.f32.mrb[2].mxu1 }
 0x1bb   : > { %1263 = vst [vmem:[#allocation2] sm:$0xff] %v1255_v17  ;;  %1265 = vst [vmem:[#allocation2 + $0x10] sm:$0xff] %v1257_v18  ;;  %v1259_v27 = vadd.f32 %v1164_v25, %v287_v15  ;;  %v1261_v28 = vadd.f32 %v1250_v26, %v289_v16  ;;  %v1166_v29 = vpop.f32.mrb[3].mxu0  ;;  %v1252_v30 = vpop.f32.mrb[3].mxu1 }
 0x1bc   : > { %1264 = vst [vmem:[#allocation2 + $0x8] sm:$0xff] %v1256_v23  ;;  %1266 = vst [vmem:[#allocation2 + $0x18] sm:$0xff] %v1258_v24  ;;  %v1260_v31 = vadd.f32 %v1166_v29, %v288_v21  ;;  %v1262_v32 = vadd.f32 %v1252_v30, %v290_v22 }
 0x1bd   : > { %1267 = vst [vmem:[#allocation2 + $0x20] sm:$0xff] %v1259_v27  ;;  %1269 = vst [vmem:[#allocation2 + $0x30] sm:$0xff] %v1261_v28 }
 0x1be   : > { %1268 = vst [vmem:[#allocation2 + $0x28] sm:$0xff] %v1260_v31  ;;  %1270 = vst [vmem:[#allocation2 + $0x38] sm:$0xff] %v1262_v32 }
 0x1c2   : > { %v1275_v36 = vld [vmem:[#allocation2] sm:$0xff]  ;;  %v1277_v42 = vld [vmem:[#allocation2 + $0x10] sm:$0xff] }
 0x1c3   : > { %v1276_v38 = vld [vmem:[#allocation2 + $0x8] sm:$0xff]  ;;  %v1278_v43 = vld [vmem:[#allocation2 + $0x18] sm:$0xff]  ;;  %v1305_v52 = vadd.f32 %v1288_v45, %v1275_v36  ;;  %v1307_v54 = vadd.f32 %v1296_v47, %v1277_v42 }
 0x1c4   : > { %v1279_v44 = vld [vmem:[#allocation2 + $0x20] sm:$0xff]  ;;  %v1281_v50 = vld [vmem:[#allocation2 + $0x30] sm:$0xff]  ;;  %v1306_v53 = vadd.f32 %v1292_v46, %v1276_v38  ;;  %v1308_v55 = vadd.f32 %v1300_v48, %v1278_v43 }
 0x1c5   : > { %v1280_v49 = vld [vmem:[#allocation2 + $0x28] sm:$0xff]  ;;  %v1282_v51 = vld [vmem:[#allocation2 + $0x38] sm:$0xff]  ;;  %v1309_v56 = vadd.f32 %v1288_v45, %v1279_v44  ;;  %v1311_v58 = vadd.f32 %v1296_v47, %v1281_v50  ;;  %v1313_v60 = vmax.f32 %v1305_v52, 0.0  ;;  %v1315_v62 = vmax.f32 %v1307_v54, 0.0 }
 0x1c6   : > { %v1310_v57 = vadd.f32 %v1292_v46, %v1280_v49  ;;  %v1312_v59 = vadd.f32 %v1300_v48, %v1282_v51  ;;  %v1314_v61 = vmax.f32 %v1306_v53, 0.0  ;;  %v1316_v63 = vmax.f32 %v1308_v55, 0.0 }
 0x1c7   : > { %v1317_v0 = vmax.f32 %v1309_v56, 0.0  ;;  %v1319_v2 = vmax.f32 %v1311_v58, 0.0  ;;  %1321 = vst [vmem:[%s2268_s25] sm:$0xff] %v1313_v60  ;;  %1323 = vst [vmem:[%s2268_s25 + $0x10] sm:$0xff] %v1315_v62 }
 0x1c8   : > { %v1318_v1 = vmax.f32 %v1310_v57, 0.0  ;;  %v1320_v3 = vmax.f32 %v1312_v59, 0.0  ;;  %1322 = vst [vmem:[%s2268_s25 + $0x8] sm:$0xff] %v1314_v61  ;;  %1324 = vst [vmem:[%s2268_s25 + $0x18] sm:$0xff] %v1316_v63 }
 0x1c9   : > { %1325 = vst [vmem:[%s2268_s25 + $0x20] sm:$0xff] %v1317_v0  ;;  %1327 = vst [vmem:[%s2268_s25 + $0x30] sm:$0xff] %v1319_v2 }
 0x1ca   : > { %1326 = vst [vmem:[%s2268_s25 + $0x28] sm:$0xff] %v1318_v1  ;;  %1328 = vst [vmem:[%s2268_s25 + $0x38] sm:$0xff] %v1320_v3 }
 0x1cb PF: > { %p2484_p11 = scmp.ne.s32.totalorder %s2482_s14, 0 }
 0x1cc   : > { %s1631_s19 = sshll.u32 (%p2484_p11), %s2054_s20, 5 }
 0x1cd   : > { %1335 = sbr.rel (!%p2484_p11) target bundleno = 468 (0x1d4), region = 71  ;;  %s1338_s5 = scalar_lea.vmem (%p2484_p11), %s2470_s3, %s1631_s19 }
 0x1ce   : > { %v1351_v4 = vld [vmem:[%s2268_s25] sm:$0xff] (%p2484_p11)  ;;  %v1355_v6 = vld [vmem:[%s2268_s25 + $0x10] sm:$0xff] (%p2484_p11) }
 0x1cf   : > { %v1353_v5 = vld [vmem:[%s2268_s25 + $0x8] sm:$0xff] (%p2484_p11)  ;;  %v1357_v7 = vld [vmem:[%s2268_s25 + $0x18] sm:$0xff] (%p2484_p11)  ;;  %1352 = vst [vmem:[%s1338_s5] sm:$0xff] (%p2484_p11), %v1351_v4  ;;  %1356 = vst [vmem:[%s1338_s5 + $0x10] sm:$0xff] (%p2484_p11), %v1355_v6 }
 0x1d0   : > { %v1359_v8 = vld [vmem:[%s2268_s25 + $0x20] sm:$0xff] (%p2484_p11)  ;;  %1354 = vst [vmem:[%s1338_s5 + $0x8] sm:$0xff] (%p2484_p11), %v1353_v5  ;;  %1358 = vst [vmem:[%s1338_s5 + $0x18] sm:$0xff] (%p2484_p11), %v1357_v7  ;;  %v1363_v10 = vld [vmem:[%s2268_s25 + $0x30] sm:$0xff] (%p2484_p11) }
 0x1d1   : > { %v1361_v9 = vld [vmem:[%s2268_s25 + $0x28] sm:$0xff] (%p2484_p11)  ;;  %1360 = vst [vmem:[%s1338_s5 + $0x100] sm:$0xff] (%p2484_p11), %v1359_v8  ;;  %v1365_v11 = vld [vmem:[%s2268_s25 + $0x38] sm:$0xff] (%p2484_p11)  ;;  %1364 = vst [vmem:[%s1338_s5 + $0x110] sm:$0xff] (%p2484_p11), %v1363_v10 }
 0x1d2   : > { %1362 = vst [vmem:[%s1338_s5 + $0x108] sm:$0xff] (%p2484_p11), %v1361_v9  ;;  %1366 = vst [vmem:[%s1338_s5 + $0x118] sm:$0xff] (%p2484_p11), %v1365_v11 }
 0x1d4 PF: > { %s16_s23 = sadd.s32 1, %s2066_s23   ;;  %s2485_s20 = sld [smem:[#allocation11_spill]] }
 0x1d5   : > { %p13_p13 = scmp.ge.s32.totalorder %s16_s23, 66   ;;  %s2486_s28 = sld [smem:[#allocation8_spill]] }
 0x1d6   : > { %s2487_s0 = sld [smem:[#allocation9_spill]]  ;;  %s2488_s22 = sld [smem:[#allocation10_spill]] }
 0x1d7   : > { %s2489_s12 = smov %s2026_s13  ;;  %s2490_s13 = smov %s2196_s11 }
 0x1d8   : > { %s2491_s14 = smov %s2034_s15  ;;  %s2492_s15 = smov %s2038_s16 }
 0x1d9   : > { %s2493_s16 = smov %s2188_s8  ;;  %s2494_s17 = smov %s2046_s18 }
 0x1da   : > { %s2495_s18 = smov %s2485_s20  ;;  %s2496_s19 = smov %s2058_s21 }
 0x1db   : > { %s2497_s20 = smov %s2486_s28  ;;  %15 = sbr.rel (!%p13_p13) target bundleno = 9 (0x9), region = 137 }
 0x1dc   : > { %s2498_s21 = smov %s2487_s0 }
 0x1e2   :  { %1382 = vsyncpa [#allocation5], 1 }
 0x1e3   :  { %1384 = vsyncpa [#allocation5 + $0x1], 1 }

</bundles_post_ra>
